<compile_context>
chip_gen: v5e
topology: v5e:2x2
jax: 0.10.0
libtpu: 0.0.40
codegen_flags: <defaults>
</compile_context>

<pallas_src>
import functools

import jax
import jax.numpy as jnp
from jax.experimental import pallas as pl
from jax.experimental.pallas import tpu as pltpu

# ----------------------------------------------------------------------------
# Problem sizes (small, consistent with the module's forward).
# ----------------------------------------------------------------------------
DECISION_DIM = 8          # stand-in for the global DECISION_DIM in the repo
MAX_LEN = 32              # conv-valid lengths: 32 -> 24 -> 16 -> 6
LATENT_DIM = 16
BATCH = 2

K1, C1_OUT = 9, 9
K2, C2_OUT = 9, 9
K3, C3_OUT = 11, 10
L1 = MAX_LEN - K1 + 1             # 24
L2 = L1 - K2 + 1                  # 16
L3 = L2 - K3 + 1                  # 6  == last_conv_size
HIDDEN = 435
HIDDEN_PAD = 512                  # 4 full 128-lane tiles (zero-padded, inert)

ROW_PAD = (K2 - 1) + (K3 - 1)     # 18 trailing scratch rows per batch block


# ----------------------------------------------------------------------------
# Fused kernel: conv1 (im2col matmul) -> conv2/conv3 (shifted-matmul accum)
#               -> w1 (per-timestep accum) -> fused [mean | log_var] head.
# Activations stay 2-D with a fixed per-sample row stride of MAX_LEN; rows
# past each level's valid length are finite garbage and never read.
# ----------------------------------------------------------------------------
def encoder_kernel(cols1_ref,
                   cw1_ref, cb1_ref,
                   cw2_ref, cb2_ref,
                   cw3_ref, cb3_ref,
                   w1_ref, b1_ref,
                   hw_ref, hb_ref,
                   out_ref, *, batch_tile):
    f32 = jnp.float32
    bt = batch_tile
    n = bt * MAX_LEN                     # rows carried to the flatten stage
    rows2 = n + (K3 - 1)                 # rows carried into conv3

    # conv1: one im2col matmul (im2col built host-side).    (n+18, C1_OUT)
    h1 = jnp.maximum(
        jnp.dot(cols1_ref[...], cw1_ref[...], preferred_element_type=f32)
        + cb1_ref[...], 0.0)

    # conv2: K2 accumulated shifted matmuls (no lane concats).   (n+10, C2)
    acc2 = jnp.dot(h1[0:rows2, :], cw2_ref[0], preferred_element_type=f32)
    for k in range(1, K2):
        acc2 = acc2 + jnp.dot(h1[k:k + rows2, :], cw2_ref[k],
                              preferred_element_type=f32)
    h2 = jnp.maximum(acc2 + cb2_ref[...], 0.0)

    # conv3: K3 accumulated shifted matmuls.                     (n, C3)
    acc3 = jnp.dot(h2[0:n, :], cw3_ref[0], preferred_element_type=f32)
    for k in range(1, K3):
        acc3 = acc3 + jnp.dot(h2[k:k + n, :], cw3_ref[k],
                              preferred_element_type=f32)
    h3 = jnp.maximum(acc3 + cb3_ref[...], 0.0)

    # w1 linear: accumulate over the L3 valid time steps; torch's
    # channel-major flatten is folded into w1's (L3, C3, HIDDEN_PAD) layout.
    h3r = h3.reshape(bt, MAX_LEN, C3_OUT)
    acc_h = jnp.dot(h3r[:, 0, :], w1_ref[0], preferred_element_type=f32)
    for t in range(1, L3):
        acc_h = acc_h + jnp.dot(h3r[:, t, :], w1_ref[t],
                                preferred_element_type=f32)
    hidden = jnp.maximum(acc_h + b1_ref[...], 0.0)           # (bt, 512)

    # Fused [mean | log_var] head: one MXU push, one store.
    out_ref[...] = (jnp.dot(hidden, hw_ref[...], preferred_element_type=f32)
                    + hb_ref[...])


# ----------------------------------------------------------------------------
# One-time parameter re-layout (hoisted out of the per-call path).
# ----------------------------------------------------------------------------
def prepare_params(params):
    f32 = jnp.float32

    def conv1_unfold(w):               # torch (Cout, Cin, K) -> (K*Cin, Cout)
        cout, cin, k = w.shape
        return jnp.transpose(w, (2, 1, 0)).reshape(k * cin, cout).astype(f32)

    def conv_taps(w):                  # torch (Cout, Cin, K) -> (K, Cin, Cout)
        return jnp.transpose(w, (2, 1, 0)).astype(f32)

    # w1: torch flatten index = c*L3 + t (channel-major .view of (B, C, L)).
    w1_3d = jnp.transpose(params['w1'].reshape(HIDDEN, C3_OUT, L3), (2, 1, 0))
    w1_3d = jnp.pad(w1_3d,
                    ((0, 0), (0, 0), (0, HIDDEN_PAD - HIDDEN))).astype(f32)
    b1 = jnp.pad(params['b1'],
                 (0, HIDDEN_PAD - HIDDEN)).reshape(1, HIDDEN_PAD).astype(f32)

    # Fused head: [mean | log_var] -> (HIDDEN_PAD, 2*LATENT), (1, 2*LATENT).
    hw = jnp.concatenate([params['mw'].T, params['lw'].T], axis=1)
    hw = jnp.pad(hw, ((0, HIDDEN_PAD - HIDDEN), (0, 0))).astype(f32)
    hb = jnp.concatenate([params['mb'], params['lb']]
                         ).reshape(1, 2 * LATENT_DIM).astype(f32)

    return dict(
        cw1=conv1_unfold(params['cw1']),
        cb1=params['cb1'].reshape(1, -1).astype(f32),
        cw2=conv_taps(params['cw2']),
        cb2=params['cb2'].reshape(1, -1).astype(f32),
        cw3=conv_taps(params['cw3']),
        cb3=params['cb3'].reshape(1, -1).astype(f32),
        w1=w1_3d, b1=b1, hw=hw, hb=hb)


# ----------------------------------------------------------------------------
# Wrapper: host-side im2col for conv1 + batch-tiled pallas_call.
# ----------------------------------------------------------------------------
def _build_cols1(x_ncw):
    # NCW -> (B, L, Cin), zero-pad time so every window exists, then im2col:
    # column index = k*Cin + c, matching conv1_unfold's layout.
    x_t = jnp.transpose(x_ncw, (0, 2, 1)).astype(jnp.float32)       # (B,L,Cin)
    x_p = jnp.pad(x_t, ((0, 0), (0, K1 - 1), (0, 0)))               # (B,L+8,Cin)
    return jnp.concatenate([x_p[:, k:k + MAX_LEN, :] for k in range(K1)],
                           axis=-1)                                 # (B,L,K1*Cin)


@functools.partial(jax.jit, static_argnames=('batch_tile',))
def cnn_encoder_pallas(x_ncw, prep, *, batch_tile=1):
    B = x_ncw.shape[0]
    assert B % batch_tile == 0, "batch must be divisible by batch_tile"
    bt = batch_tile
    nb = B // bt
    rows_blk = bt * MAX_LEN + ROW_PAD

    cols1 = _build_cols1(x_ncw).reshape(nb, bt * MAX_LEN, K1 * DECISION_DIM)
    cols1 = jnp.pad(cols1, ((0, 0), (0, ROW_PAD), (0, 0)))  # (nb, rows_blk, 72)

    def full(arr):       # whole array resident in VMEM, constant block index
        nd = arr.ndim
        return pl.BlockSpec(arr.shape, lambda i, _n=nd: (0,) * _n)

    z = pl.pallas_call(
        functools.partial(encoder_kernel, batch_tile=bt),
        out_shape=jax.ShapeDtypeStruct((nb, bt, 2 * LATENT_DIM), jnp.float32),
        grid=(nb,),
        in_specs=[
            pl.BlockSpec((None, rows_blk, K1 * DECISION_DIM),
                         lambda i: (i, 0, 0)),
            full(prep['cw1']), full(prep['cb1']),
            full(prep['cw2']), full(prep['cb2']),
            full(prep['cw3']), full(prep['cb3']),
            full(prep['w1']), full(prep['b1']),
            full(prep['hw']), full(prep['hb']),
        ],
        out_specs=pl.BlockSpec((None, bt, 2 * LATENT_DIM), lambda i: (i, 0, 0)),
        compiler_params=pltpu.CompilerParams(
            dimension_semantics=("parallel",)),
    )(cols1,
      prep['cw1'], prep['cb1'],
      prep['cw2'], prep['cb2'],
      prep['cw3'], prep['cb3'],
      prep['w1'], prep['b1'],
      prep['hw'], prep['hb'])

    z = z.reshape(B, 2 * LATENT_DIM)
    return z[:, :LATENT_DIM], z[:, LATENT_DIM:]


# ----------------------------------------------------------------------------
# Pure-JAX reference (mirrors PyTorch NCW semantics exactly).
# ----------------------------------------------------------------------------
def cnn_encoder_ref(x_ncw, params):
    def conv1d_ncw(x, w, b):
        out = jax.lax.conv_general_dilated(
            x, w, window_strides=(1,), padding='VALID',
            dimension_numbers=('NCH', 'OIH', 'NCH'))
        return out + b[None, :, None]

    h1 = jax.nn.relu(conv1d_ncw(x_ncw, params['cw1'], params['cb1']))
    h2 = jax.nn.relu(conv1d_ncw(h1, params['cw2'], params['cb2']))
    h3 = jax.nn.relu(conv1d_ncw(h2, params['cw3'], params['cb3']))
    flat = h3.reshape(x_ncw.shape[0], -1)                    # channel-major
    h = jax.nn.relu(flat @ params['w1'].T + params['b1'])
    z_mean = h @ params['mw'].T + params['mb']
    z_log_var = h @ params['lw'].T + params['lb']
    return z_mean, z_log_var


# ----------------------------------------------------------------------------
# Deterministic parameter init (torch-convention shapes) + run.
# ----------------------------------------------------------------------------
def init_params(key):
    shapes = {
        'cw1': (C1_OUT, DECISION_DIM, K1), 'cb1': (C1_OUT,),
        'cw2': (C2_OUT, C1_OUT, K2),       'cb2': (C2_OUT,),
        'cw3': (C3_OUT, C2_OUT, K3),       'cb3': (C3_OUT,),
        'w1':  (HIDDEN, C3_OUT * L3),      'b1':  (HIDDEN,),
        'mw':  (LATENT_DIM, HIDDEN),       'mb':  (LATENT_DIM,),
        'lw':  (LATENT_DIM, HIDDEN),       'lb':  (LATENT_DIM,),
    }
    params = {}
    keys = jax.random.split(key, len(shapes))
    for k, (name, shp) in zip(keys, sorted(shapes.items())):
        params[name] = 0.1 * jax.random.normal(k, shp, dtype=jnp.float32)
    return params


if __name__ == "__main__":
    key = jax.random.PRNGKey(0)
    k_x, k_p = jax.random.split(key)
    x = jax.random.normal(k_x, (BATCH, DECISION_DIM, MAX_LEN), dtype=jnp.float32)
    params = init_params(k_p)

    prep = prepare_params(params)                 # one-time re-layout
    zm_ref, zl_ref = cnn_encoder_ref(x, params)

    # Primary path: one sample per grid block, batch axis marked "parallel".
    z_mean, z_log_var = cnn_encoder_pallas(x, prep, batch_tile=1)
    jax.block_until_ready((z_mean, z_log_var))
    assert z_mean.shape == (BATCH, LATENT_DIM)
    assert z_log_var.shape == (BATCH, LATENT_DIM)
    assert jnp.allclose(z_mean, zm_ref, atol=1e-4, rtol=1e-4)
    assert jnp.allclose(z_log_var, zl_ref, atol=1e-4, rtol=1e-4)

    # Same kernel with the whole batch folded into one block (grid=(1,)).
    z_mean2, z_log_var2 = cnn_encoder_pallas(x, prep, batch_tile=BATCH)
    jax.block_until_ready((z_mean2, z_log_var2))
    assert jnp.allclose(z_mean2, zm_ref, atol=1e-4, rtol=1e-4)
    assert jnp.allclose(z_log_var2, zl_ref, atol=1e-4, rtol=1e-4)

    print("KERNEL_OK")
</pallas_src>

<mosaic_0001>
module attributes {stable_mosaic.version = 11 : i64} {
  func.func @encoder_kernel(%arg0: i32, %arg1: memref<1x50x72xf32, #tpu.memory_space<vmem>>, %arg2: memref<72x9xf32, #tpu.memory_space<vmem>>, %arg3: memref<1x9xf32, #tpu.memory_space<vmem>>, %arg4: memref<9x9x9xf32, #tpu.memory_space<vmem>>, %arg5: memref<1x9xf32, #tpu.memory_space<vmem>>, %arg6: memref<11x9x10xf32, #tpu.memory_space<vmem>>, %arg7: memref<1x10xf32, #tpu.memory_space<vmem>>, %arg8: memref<6x10x512xf32, #tpu.memory_space<vmem>>, %arg9: memref<1x512xf32, #tpu.memory_space<vmem>>, %arg10: memref<512x32xf32, #tpu.memory_space<vmem>>, %arg11: memref<1x32xf32, #tpu.memory_space<vmem>>, %arg12: memref<1x1x32xf32, #tpu.memory_space<vmem>>) attributes {dimension_semantics = [#tpu.dimension_semantics<parallel>], iteration_bounds = array<i64: 2>, scalar_prefetch = 0 : i64, scratch_operands = 0 : i64, tpu.core_type = #tpu.core_type<tc>, window_params = [{transform_indices = @transform_0, window_bounds = array<i64: 1, 50, 72>}, {pipeline_mode = #tpu.pipeline_mode<synchronous>, transform_indices = @transform_1, window_bounds = array<i64: 72, 9>}, {pipeline_mode = #tpu.pipeline_mode<synchronous>, transform_indices = @transform_2, window_bounds = array<i64: 1, 9>}, {pipeline_mode = #tpu.pipeline_mode<synchronous>, transform_indices = @transform_3, window_bounds = array<i64: 9, 9, 9>}, {pipeline_mode = #tpu.pipeline_mode<synchronous>, transform_indices = @transform_4, window_bounds = array<i64: 1, 9>}, {pipeline_mode = #tpu.pipeline_mode<synchronous>, transform_indices = @transform_5, window_bounds = array<i64: 11, 9, 10>}, {pipeline_mode = #tpu.pipeline_mode<synchronous>, transform_indices = @transform_6, window_bounds = array<i64: 1, 10>}, {pipeline_mode = #tpu.pipeline_mode<synchronous>, transform_indices = @transform_7, window_bounds = array<i64: 6, 10, 512>}, {pipeline_mode = #tpu.pipeline_mode<synchronous>, transform_indices = @transform_8, window_bounds = array<i64: 1, 512>}, {pipeline_mode = #tpu.pipeline_mode<synchronous>, transform_indices = @transform_9, window_bounds = array<i64: 512, 32>}, {pipeline_mode = #tpu.pipeline_mode<synchronous>, transform_indices = @transform_10, window_bounds = array<i64: 1, 32>}, {transform_indices = @transform_11, window_bounds = array<i64: 1, 1, 32>}]} {
    %c0 = arith.constant 0 : index
    %c0_0 = arith.constant 0 : index
    %c0_1 = arith.constant 0 : index
    %0 = vector.load %arg1[%c0, %c0_0, %c0_1] : memref<1x50x72xf32, #tpu.memory_space<vmem>>, vector<1x50x72xf32>
    %1 = vector.shape_cast %0 : vector<1x50x72xf32> to vector<50x72xf32>
    %c0_2 = arith.constant 0 : index
    %c0_3 = arith.constant 0 : index
    %2 = vector.load %arg2[%c0_2, %c0_3] : memref<72x9xf32, #tpu.memory_space<vmem>>, vector<72x9xf32>
    %cst = arith.constant dense<0.000000e+00> : vector<50x9xf32>
    %3 = tpu.matmul %1, %2, %cst {dimension_numbers = #tpu.dot_dimension_numbers<[1], [0], [0], [1], [0, 0, 1, 1], [], []>} : vector<50x72xf32>, vector<72x9xf32>, vector<50x9xf32> -> vector<50x9xf32>
    %c0_4 = arith.constant 0 : index
    %c0_5 = arith.constant 0 : index
    %4 = vector.load %arg3[%c0_4, %c0_5] : memref<1x9xf32, #tpu.memory_space<vmem>>, vector<1x9xf32>
    %5 = vector.broadcast %4 : vector<1x9xf32> to vector<50x9xf32>
    %6 = arith.addf %3, %5 : vector<50x9xf32>
    %cst_6 = arith.constant 0.000000e+00 : f32
    %7 = vector.broadcast %cst_6 : f32 to vector<50x9xf32>
    %8 = arith.maximumf %6, %7 : vector<50x9xf32>
    %9 = vector.extract_strided_slice %8 {offsets = [0, 0], sizes = [42, 9], strides = [1, 1]} : vector<50x9xf32> to vector<42x9xf32>
    %c0_7 = arith.constant 0 : index
    %c0_8 = arith.constant 0 : index
    %c0_9 = arith.constant 0 : index
    %10 = vector.load %arg4[%c0_7, %c0_8, %c0_9] : memref<9x9x9xf32, #tpu.memory_space<vmem>>, vector<1x9x9xf32>
    %11 = vector.shape_cast %10 : vector<1x9x9xf32> to vector<9x9xf32>
    %cst_10 = arith.constant dense<0.000000e+00> : vector<42x9xf32>
    %12 = tpu.matmul %9, %11, %cst_10 {dimension_numbers = #tpu.dot_dimension_numbers<[1], [0], [0], [1], [0, 0, 1, 1], [], []>} : vector<42x9xf32>, vector<9x9xf32>, vector<42x9xf32> -> vector<42x9xf32>
    %13 = vector.extract_strided_slice %8 {offsets = [1, 0], sizes = [42, 9], strides = [1, 1]} : vector<50x9xf32> to vector<42x9xf32>
    %c1 = arith.constant 1 : index
    %c0_11 = arith.constant 0 : index
    %c0_12 = arith.constant 0 : index
    %14 = vector.load %arg4[%c1, %c0_11, %c0_12] : memref<9x9x9xf32, #tpu.memory_space<vmem>>, vector<1x9x9xf32>
    %15 = vector.shape_cast %14 : vector<1x9x9xf32> to vector<9x9xf32>
    %cst_13 = arith.constant dense<0.000000e+00> : vector<42x9xf32>
    %16 = tpu.matmul %13, %15, %cst_13 {dimension_numbers = #tpu.dot_dimension_numbers<[1], [0], [0], [1], [0, 0, 1, 1], [], []>} : vector<42x9xf32>, vector<9x9xf32>, vector<42x9xf32> -> vector<42x9xf32>
    %17 = arith.addf %12, %16 : vector<42x9xf32>
    %18 = vector.extract_strided_slice %8 {offsets = [2, 0], sizes = [42, 9], strides = [1, 1]} : vector<50x9xf32> to vector<42x9xf32>
    %c2 = arith.constant 2 : index
    %c0_14 = arith.constant 0 : index
    %c0_15 = arith.constant 0 : index
    %19 = vector.load %arg4[%c2, %c0_14, %c0_15] : memref<9x9x9xf32, #tpu.memory_space<vmem>>, vector<1x9x9xf32>
    %20 = vector.shape_cast %19 : vector<1x9x9xf32> to vector<9x9xf32>
    %cst_16 = arith.constant dense<0.000000e+00> : vector<42x9xf32>
    %21 = tpu.matmul %18, %20, %cst_16 {dimension_numbers = #tpu.dot_dimension_numbers<[1], [0], [0], [1], [0, 0, 1, 1], [], []>} : vector<42x9xf32>, vector<9x9xf32>, vector<42x9xf32> -> vector<42x9xf32>
    %22 = arith.addf %17, %21 : vector<42x9xf32>
    %23 = vector.extract_strided_slice %8 {offsets = [3, 0], sizes = [42, 9], strides = [1, 1]} : vector<50x9xf32> to vector<42x9xf32>
    %c3 = arith.constant 3 : index
    %c0_17 = arith.constant 0 : index
    %c0_18 = arith.constant 0 : index
    %24 = vector.load %arg4[%c3, %c0_17, %c0_18] : memref<9x9x9xf32, #tpu.memory_space<vmem>>, vector<1x9x9xf32>
    %25 = vector.shape_cast %24 : vector<1x9x9xf32> to vector<9x9xf32>
    %cst_19 = arith.constant dense<0.000000e+00> : vector<42x9xf32>
    %26 = tpu.matmul %23, %25, %cst_19 {dimension_numbers = #tpu.dot_dimension_numbers<[1], [0], [0], [1], [0, 0, 1, 1], [], []>} : vector<42x9xf32>, vector<9x9xf32>, vector<42x9xf32> -> vector<42x9xf32>
    %27 = arith.addf %22, %26 : vector<42x9xf32>
    %28 = vector.extract_strided_slice %8 {offsets = [4, 0], sizes = [42, 9], strides = [1, 1]} : vector<50x9xf32> to vector<42x9xf32>
    %c4 = arith.constant 4 : index
    %c0_20 = arith.constant 0 : index
    %c0_21 = arith.constant 0 : index
    %29 = vector.load %arg4[%c4, %c0_20, %c0_21] : memref<9x9x9xf32, #tpu.memory_space<vmem>>, vector<1x9x9xf32>
    %30 = vector.shape_cast %29 : vector<1x9x9xf32> to vector<9x9xf32>
    %cst_22 = arith.constant dense<0.000000e+00> : vector<42x9xf32>
    %31 = tpu.matmul %28, %30, %cst_22 {dimension_numbers = #tpu.dot_dimension_numbers<[1], [0], [0], [1], [0, 0, 1, 1], [], []>} : vector<42x9xf32>, vector<9x9xf32>, vector<42x9xf32> -> vector<42x9xf32>
    %32 = arith.addf %27, %31 : vector<42x9xf32>
    %33 = vector.extract_strided_slice %8 {offsets = [5, 0], sizes = [42, 9], strides = [1, 1]} : vector<50x9xf32> to vector<42x9xf32>
    %c5 = arith.constant 5 : index
    %c0_23 = arith.constant 0 : index
    %c0_24 = arith.constant 0 : index
    %34 = vector.load %arg4[%c5, %c0_23, %c0_24] : memref<9x9x9xf32, #tpu.memory_space<vmem>>, vector<1x9x9xf32>
    %35 = vector.shape_cast %34 : vector<1x9x9xf32> to vector<9x9xf32>
    %cst_25 = arith.constant dense<0.000000e+00> : vector<42x9xf32>
    %36 = tpu.matmul %33, %35, %cst_25 {dimension_numbers = #tpu.dot_dimension_numbers<[1], [0], [0], [1], [0, 0, 1, 1], [], []>} : vector<42x9xf32>, vector<9x9xf32>, vector<42x9xf32> -> vector<42x9xf32>
    %37 = arith.addf %32, %36 : vector<42x9xf32>
    %38 = vector.extract_strided_slice %8 {offsets = [6, 0], sizes = [42, 9], strides = [1, 1]} : vector<50x9xf32> to vector<42x9xf32>
    %c6 = arith.constant 6 : index
    %c0_26 = arith.constant 0 : index
    %c0_27 = arith.constant 0 : index
    %39 = vector.load %arg4[%c6, %c0_26, %c0_27] : memref<9x9x9xf32, #tpu.memory_space<vmem>>, vector<1x9x9xf32>
    %40 = vector.shape_cast %39 : vector<1x9x9xf32> to vector<9x9xf32>
    %cst_28 = arith.constant dense<0.000000e+00> : vector<42x9xf32>
    %41 = tpu.matmul %38, %40, %cst_28 {dimension_numbers = #tpu.dot_dimension_numbers<[1], [0], [0], [1], [0, 0, 1, 1], [], []>} : vector<42x9xf32>, vector<9x9xf32>, vector<42x9xf32> -> vector<42x9xf32>
    %42 = arith.addf %37, %41 : vector<42x9xf32>
    %43 = vector.extract_strided_slice %8 {offsets = [7, 0], sizes = [42, 9], strides = [1, 1]} : vector<50x9xf32> to vector<42x9xf32>
    %c7 = arith.constant 7 : index
    %c0_29 = arith.constant 0 : index
    %c0_30 = arith.constant 0 : index
    %44 = vector.load %arg4[%c7, %c0_29, %c0_30] : memref<9x9x9xf32, #tpu.memory_space<vmem>>, vector<1x9x9xf32>
    %45 = vector.shape_cast %44 : vector<1x9x9xf32> to vector<9x9xf32>
    %cst_31 = arith.constant dense<0.000000e+00> : vector<42x9xf32>
    %46 = tpu.matmul %43, %45, %cst_31 {dimension_numbers = #tpu.dot_dimension_numbers<[1], [0], [0], [1], [0, 0, 1, 1], [], []>} : vector<42x9xf32>, vector<9x9xf32>, vector<42x9xf32> -> vector<42x9xf32>
    %47 = arith.addf %42, %46 : vector<42x9xf32>
    %48 = vector.extract_strided_slice %8 {offsets = [8, 0], sizes = [42, 9], strides = [1, 1]} : vector<50x9xf32> to vector<42x9xf32>
    %c8 = arith.constant 8 : index
    %c0_32 = arith.constant 0 : index
    %c0_33 = arith.constant 0 : index
    %49 = vector.load %arg4[%c8, %c0_32, %c0_33] : memref<9x9x9xf32, #tpu.memory_space<vmem>>, vector<1x9x9xf32>
    %50 = vector.shape_cast %49 : vector<1x9x9xf32> to vector<9x9xf32>
    %cst_34 = arith.constant dense<0.000000e+00> : vector<42x9xf32>
    %51 = tpu.matmul %48, %50, %cst_34 {dimension_numbers = #tpu.dot_dimension_numbers<[1], [0], [0], [1], [0, 0, 1, 1], [], []>} : vector<42x9xf32>, vector<9x9xf32>, vector<42x9xf32> -> vector<42x9xf32>
    %52 = arith.addf %47, %51 : vector<42x9xf32>
    %c0_35 = arith.constant 0 : index
    %c0_36 = arith.constant 0 : index
    %53 = vector.load %arg5[%c0_35, %c0_36] : memref<1x9xf32, #tpu.memory_space<vmem>>, vector<1x9xf32>
    %54 = vector.broadcast %53 : vector<1x9xf32> to vector<42x9xf32>
    %55 = arith.addf %52, %54 : vector<42x9xf32>
    %cst_37 = arith.constant 0.000000e+00 : f32
    %56 = vector.broadcast %cst_37 : f32 to vector<42x9xf32>
    %57 = arith.maximumf %55, %56 : vector<42x9xf32>
    %58 = vector.extract_strided_slice %57 {offsets = [0, 0], sizes = [32, 9], strides = [1, 1]} : vector<42x9xf32> to vector<32x9xf32>
    %c0_38 = arith.constant 0 : index
    %c0_39 = arith.constant 0 : index
    %c0_40 = arith.constant 0 : index
    %59 = vector.load %arg6[%c0_38, %c0_39, %c0_40] : memref<11x9x10xf32, #tpu.memory_space<vmem>>, vector<1x9x10xf32>
    %60 = vector.shape_cast %59 : vector<1x9x10xf32> to vector<9x10xf32>
    %cst_41 = arith.constant dense<0.000000e+00> : vector<32x10xf32>
    %61 = tpu.matmul %58, %60, %cst_41 {dimension_numbers = #tpu.dot_dimension_numbers<[1], [0], [0], [1], [0, 0, 1, 1], [], []>} : vector<32x9xf32>, vector<9x10xf32>, vector<32x10xf32> -> vector<32x10xf32>
    %62 = vector.extract_strided_slice %57 {offsets = [1, 0], sizes = [32, 9], strides = [1, 1]} : vector<42x9xf32> to vector<32x9xf32>
    %c1_42 = arith.constant 1 : index
    %c0_43 = arith.constant 0 : index
    %c0_44 = arith.constant 0 : index
    %63 = vector.load %arg6[%c1_42, %c0_43, %c0_44] : memref<11x9x10xf32, #tpu.memory_space<vmem>>, vector<1x9x10xf32>
    %64 = vector.shape_cast %63 : vector<1x9x10xf32> to vector<9x10xf32>
    %cst_45 = arith.constant dense<0.000000e+00> : vector<32x10xf32>
    %65 = tpu.matmul %62, %64, %cst_45 {dimension_numbers = #tpu.dot_dimension_numbers<[1], [0], [0], [1], [0, 0, 1, 1], [], []>} : vector<32x9xf32>, vector<9x10xf32>, vector<32x10xf32> -> vector<32x10xf32>
    %66 = arith.addf %61, %65 : vector<32x10xf32>
    %67 = vector.extract_strided_slice %57 {offsets = [2, 0], sizes = [32, 9], strides = [1, 1]} : vector<42x9xf32> to vector<32x9xf32>
    %c2_46 = arith.constant 2 : index
    %c0_47 = arith.constant 0 : index
    %c0_48 = arith.constant 0 : index
    %68 = vector.load %arg6[%c2_46, %c0_47, %c0_48] : memref<11x9x10xf32, #tpu.memory_space<vmem>>, vector<1x9x10xf32>
    %69 = vector.shape_cast %68 : vector<1x9x10xf32> to vector<9x10xf32>
    %cst_49 = arith.constant dense<0.000000e+00> : vector<32x10xf32>
    %70 = tpu.matmul %67, %69, %cst_49 {dimension_numbers = #tpu.dot_dimension_numbers<[1], [0], [0], [1], [0, 0, 1, 1], [], []>} : vector<32x9xf32>, vector<9x10xf32>, vector<32x10xf32> -> vector<32x10xf32>
    %71 = arith.addf %66, %70 : vector<32x10xf32>
    %72 = vector.extract_strided_slice %57 {offsets = [3, 0], sizes = [32, 9], strides = [1, 1]} : vector<42x9xf32> to vector<32x9xf32>
    %c3_50 = arith.constant 3 : index
    %c0_51 = arith.constant 0 : index
    %c0_52 = arith.constant 0 : index
    %73 = vector.load %arg6[%c3_50, %c0_51, %c0_52] : memref<11x9x10xf32, #tpu.memory_space<vmem>>, vector<1x9x10xf32>
    %74 = vector.shape_cast %73 : vector<1x9x10xf32> to vector<9x10xf32>
    %cst_53 = arith.constant dense<0.000000e+00> : vector<32x10xf32>
    %75 = tpu.matmul %72, %74, %cst_53 {dimension_numbers = #tpu.dot_dimension_numbers<[1], [0], [0], [1], [0, 0, 1, 1], [], []>} : vector<32x9xf32>, vector<9x10xf32>, vector<32x10xf32> -> vector<32x10xf32>
    %76 = arith.addf %71, %75 : vector<32x10xf32>
    %77 = vector.extract_strided_slice %57 {offsets = [4, 0], sizes = [32, 9], strides = [1, 1]} : vector<42x9xf32> to vector<32x9xf32>
    %c4_54 = arith.constant 4 : index
    %c0_55 = arith.constant 0 : index
    %c0_56 = arith.constant 0 : index
    %78 = vector.load %arg6[%c4_54, %c0_55, %c0_56] : memref<11x9x10xf32, #tpu.memory_space<vmem>>, vector<1x9x10xf32>
    %79 = vector.shape_cast %78 : vector<1x9x10xf32> to vector<9x10xf32>
    %cst_57 = arith.constant dense<0.000000e+00> : vector<32x10xf32>
    %80 = tpu.matmul %77, %79, %cst_57 {dimension_numbers = #tpu.dot_dimension_numbers<[1], [0], [0], [1], [0, 0, 1, 1], [], []>} : vector<32x9xf32>, vector<9x10xf32>, vector<32x10xf32> -> vector<32x10xf32>
    %81 = arith.addf %76, %80 : vector<32x10xf32>
    %82 = vector.extract_strided_slice %57 {offsets = [5, 0], sizes = [32, 9], strides = [1, 1]} : vector<42x9xf32> to vector<32x9xf32>
    %c5_58 = arith.constant 5 : index
    %c0_59 = arith.constant 0 : index
    %c0_60 = arith.constant 0 : index
    %83 = vector.load %arg6[%c5_58, %c0_59, %c0_60] : memref<11x9x10xf32, #tpu.memory_space<vmem>>, vector<1x9x10xf32>
    %84 = vector.shape_cast %83 : vector<1x9x10xf32> to vector<9x10xf32>
    %cst_61 = arith.constant dense<0.000000e+00> : vector<32x10xf32>
    %85 = tpu.matmul %82, %84, %cst_61 {dimension_numbers = #tpu.dot_dimension_numbers<[1], [0], [0], [1], [0, 0, 1, 1], [], []>} : vector<32x9xf32>, vector<9x10xf32>, vector<32x10xf32> -> vector<32x10xf32>
    %86 = arith.addf %81, %85 : vector<32x10xf32>
    %87 = vector.extract_strided_slice %57 {offsets = [6, 0], sizes = [32, 9], strides = [1, 1]} : vector<42x9xf32> to vector<32x9xf32>
    %c6_62 = arith.constant 6 : index
    %c0_63 = arith.constant 0 : index
    %c0_64 = arith.constant 0 : index
    %88 = vector.load %arg6[%c6_62, %c0_63, %c0_64] : memref<11x9x10xf32, #tpu.memory_space<vmem>>, vector<1x9x10xf32>
    %89 = vector.shape_cast %88 : vector<1x9x10xf32> to vector<9x10xf32>
    %cst_65 = arith.constant dense<0.000000e+00> : vector<32x10xf32>
    %90 = tpu.matmul %87, %89, %cst_65 {dimension_numbers = #tpu.dot_dimension_numbers<[1], [0], [0], [1], [0, 0, 1, 1], [], []>} : vector<32x9xf32>, vector<9x10xf32>, vector<32x10xf32> -> vector<32x10xf32>
    %91 = arith.addf %86, %90 : vector<32x10xf32>
    %92 = vector.extract_strided_slice %57 {offsets = [7, 0], sizes = [32, 9], strides = [1, 1]} : vector<42x9xf32> to vector<32x9xf32>
    %c7_66 = arith.constant 7 : index
    %c0_67 = arith.constant 0 : index
    %c0_68 = arith.constant 0 : index
    %93 = vector.load %arg6[%c7_66, %c0_67, %c0_68] : memref<11x9x10xf32, #tpu.memory_space<vmem>>, vector<1x9x10xf32>
    %94 = vector.shape_cast %93 : vector<1x9x10xf32> to vector<9x10xf32>
    %cst_69 = arith.constant dense<0.000000e+00> : vector<32x10xf32>
    %95 = tpu.matmul %92, %94, %cst_69 {dimension_numbers = #tpu.dot_dimension_numbers<[1], [0], [0], [1], [0, 0, 1, 1], [], []>} : vector<32x9xf32>, vector<9x10xf32>, vector<32x10xf32> -> vector<32x10xf32>
    %96 = arith.addf %91, %95 : vector<32x10xf32>
    %97 = vector.extract_strided_slice %57 {offsets = [8, 0], sizes = [32, 9], strides = [1, 1]} : vector<42x9xf32> to vector<32x9xf32>
    %c8_70 = arith.constant 8 : index
    %c0_71 = arith.constant 0 : index
    %c0_72 = arith.constant 0 : index
    %98 = vector.load %arg6[%c8_70, %c0_71, %c0_72] : memref<11x9x10xf32, #tpu.memory_space<vmem>>, vector<1x9x10xf32>
    %99 = vector.shape_cast %98 : vector<1x9x10xf32> to vector<9x10xf32>
    %cst_73 = arith.constant dense<0.000000e+00> : vector<32x10xf32>
    %100 = tpu.matmul %97, %99, %cst_73 {dimension_numbers = #tpu.dot_dimension_numbers<[1], [0], [0], [1], [0, 0, 1, 1], [], []>} : vector<32x9xf32>, vector<9x10xf32>, vector<32x10xf32> -> vector<32x10xf32>
    %101 = arith.addf %96, %100 : vector<32x10xf32>
    %102 = vector.extract_strided_slice %57 {offsets = [9, 0], sizes = [32, 9], strides = [1, 1]} : vector<42x9xf32> to vector<32x9xf32>
    %c9 = arith.constant 9 : index
    %c0_74 = arith.constant 0 : index
    %c0_75 = arith.constant 0 : index
    %103 = vector.load %arg6[%c9, %c0_74, %c0_75] : memref<11x9x10xf32, #tpu.memory_space<vmem>>, vector<1x9x10xf32>
    %104 = vector.shape_cast %103 : vector<1x9x10xf32> to vector<9x10xf32>
    %cst_76 = arith.constant dense<0.000000e+00> : vector<32x10xf32>
    %105 = tpu.matmul %102, %104, %cst_76 {dimension_numbers = #tpu.dot_dimension_numbers<[1], [0], [0], [1], [0, 0, 1, 1], [], []>} : vector<32x9xf32>, vector<9x10xf32>, vector<32x10xf32> -> vector<32x10xf32>
    %106 = arith.addf %101, %105 : vector<32x10xf32>
    %107 = vector.extract_strided_slice %57 {offsets = [10, 0], sizes = [32, 9], strides = [1, 1]} : vector<42x9xf32> to vector<32x9xf32>
    %c10 = arith.constant 10 : index
    %c0_77 = arith.constant 0 : index
    %c0_78 = arith.constant 0 : index
    %108 = vector.load %arg6[%c10, %c0_77, %c0_78] : memref<11x9x10xf32, #tpu.memory_space<vmem>>, vector<1x9x10xf32>
    %109 = vector.shape_cast %108 : vector<1x9x10xf32> to vector<9x10xf32>
    %cst_79 = arith.constant dense<0.000000e+00> : vector<32x10xf32>
    %110 = tpu.matmul %107, %109, %cst_79 {dimension_numbers = #tpu.dot_dimension_numbers<[1], [0], [0], [1], [0, 0, 1, 1], [], []>} : vector<32x9xf32>, vector<9x10xf32>, vector<32x10xf32> -> vector<32x10xf32>
    %111 = arith.addf %106, %110 : vector<32x10xf32>
    %c0_80 = arith.constant 0 : index
    %c0_81 = arith.constant 0 : index
    %112 = vector.load %arg7[%c0_80, %c0_81] : memref<1x10xf32, #tpu.memory_space<vmem>>, vector<1x10xf32>
    %113 = vector.broadcast %112 : vector<1x10xf32> to vector<32x10xf32>
    %114 = arith.addf %111, %113 : vector<32x10xf32>
    %cst_82 = arith.constant 0.000000e+00 : f32
    %115 = vector.broadcast %cst_82 : f32 to vector<32x10xf32>
    %116 = arith.maximumf %114, %115 : vector<32x10xf32>
    %117 = vector.shape_cast %116 : vector<32x10xf32> to vector<1x32x10xf32>
    %118 = vector.extract_strided_slice %117 {offsets = [0, 0, 0], sizes = [1, 1, 10], strides = [1, 1, 1]} : vector<1x32x10xf32> to vector<1x1x10xf32>
    %119 = vector.shape_cast %118 : vector<1x1x10xf32> to vector<1x10xf32>
    %c0_83 = arith.constant 0 : index
    %c0_84 = arith.constant 0 : index
    %c0_85 = arith.constant 0 : index
    %120 = vector.load %arg8[%c0_83, %c0_84, %c0_85] : memref<6x10x512xf32, #tpu.memory_space<vmem>>, vector<1x10x512xf32>
    %121 = vector.shape_cast %120 : vector<1x10x512xf32> to vector<10x512xf32>
    %cst_86 = arith.constant dense<0.000000e+00> : vector<1x512xf32>
    %122 = tpu.matmul %119, %121, %cst_86 {dimension_numbers = #tpu.dot_dimension_numbers<[1], [0], [0], [1], [0, 0, 1, 1], [], []>} : vector<1x10xf32>, vector<10x512xf32>, vector<1x512xf32> -> vector<1x512xf32>
    %123 = vector.extract_strided_slice %117 {offsets = [0, 1, 0], sizes = [1, 1, 10], strides = [1, 1, 1]} : vector<1x32x10xf32> to vector<1x1x10xf32>
    %124 = vector.shape_cast %123 : vector<1x1x10xf32> to vector<1x10xf32>
    %c1_87 = arith.constant 1 : index
    %c0_88 = arith.constant 0 : index
    %c0_89 = arith.constant 0 : index
    %125 = vector.load %arg8[%c1_87, %c0_88, %c0_89] : memref<6x10x512xf32, #tpu.memory_space<vmem>>, vector<1x10x512xf32>
    %126 = vector.shape_cast %125 : vector<1x10x512xf32> to vector<10x512xf32>
    %cst_90 = arith.constant dense<0.000000e+00> : vector<1x512xf32>
    %127 = tpu.matmul %124, %126, %cst_90 {dimension_numbers = #tpu.dot_dimension_numbers<[1], [0], [0], [1], [0, 0, 1, 1], [], []>} : vector<1x10xf32>, vector<10x512xf32>, vector<1x512xf32> -> vector<1x512xf32>
    %128 = arith.addf %122, %127 : vector<1x512xf32>
    %129 = vector.extract_strided_slice %117 {offsets = [0, 2, 0], sizes = [1, 1, 10], strides = [1, 1, 1]} : vector<1x32x10xf32> to vector<1x1x10xf32>
    %130 = vector.shape_cast %129 : vector<1x1x10xf32> to vector<1x10xf32>
    %c2_91 = arith.constant 2 : index
    %c0_92 = arith.constant 0 : index
    %c0_93 = arith.constant 0 : index
    %131 = vector.load %arg8[%c2_91, %c0_92, %c0_93] : memref<6x10x512xf32, #tpu.memory_space<vmem>>, vector<1x10x512xf32>
    %132 = vector.shape_cast %131 : vector<1x10x512xf32> to vector<10x512xf32>
    %cst_94 = arith.constant dense<0.000000e+00> : vector<1x512xf32>
    %133 = tpu.matmul %130, %132, %cst_94 {dimension_numbers = #tpu.dot_dimension_numbers<[1], [0], [0], [1], [0, 0, 1, 1], [], []>} : vector<1x10xf32>, vector<10x512xf32>, vector<1x512xf32> -> vector<1x512xf32>
    %134 = arith.addf %128, %133 : vector<1x512xf32>
    %135 = vector.extract_strided_slice %117 {offsets = [0, 3, 0], sizes = [1, 1, 10], strides = [1, 1, 1]} : vector<1x32x10xf32> to vector<1x1x10xf32>
    %136 = vector.shape_cast %135 : vector<1x1x10xf32> to vector<1x10xf32>
    %c3_95 = arith.constant 3 : index
    %c0_96 = arith.constant 0 : index
    %c0_97 = arith.constant 0 : index
    %137 = vector.load %arg8[%c3_95, %c0_96, %c0_97] : memref<6x10x512xf32, #tpu.memory_space<vmem>>, vector<1x10x512xf32>
    %138 = vector.shape_cast %137 : vector<1x10x512xf32> to vector<10x512xf32>
    %cst_98 = arith.constant dense<0.000000e+00> : vector<1x512xf32>
    %139 = tpu.matmul %136, %138, %cst_98 {dimension_numbers = #tpu.dot_dimension_numbers<[1], [0], [0], [1], [0, 0, 1, 1], [], []>} : vector<1x10xf32>, vector<10x512xf32>, vector<1x512xf32> -> vector<1x512xf32>
    %140 = arith.addf %134, %139 : vector<1x512xf32>
    %141 = vector.extract_strided_slice %117 {offsets = [0, 4, 0], sizes = [1, 1, 10], strides = [1, 1, 1]} : vector<1x32x10xf32> to vector<1x1x10xf32>
    %142 = vector.shape_cast %141 : vector<1x1x10xf32> to vector<1x10xf32>
    %c4_99 = arith.constant 4 : index
    %c0_100 = arith.constant 0 : index
    %c0_101 = arith.constant 0 : index
    %143 = vector.load %arg8[%c4_99, %c0_100, %c0_101] : memref<6x10x512xf32, #tpu.memory_space<vmem>>, vector<1x10x512xf32>
    %144 = vector.shape_cast %143 : vector<1x10x512xf32> to vector<10x512xf32>
    %cst_102 = arith.constant dense<0.000000e+00> : vector<1x512xf32>
    %145 = tpu.matmul %142, %144, %cst_102 {dimension_numbers = #tpu.dot_dimension_numbers<[1], [0], [0], [1], [0, 0, 1, 1], [], []>} : vector<1x10xf32>, vector<10x512xf32>, vector<1x512xf32> -> vector<1x512xf32>
    %146 = arith.addf %140, %145 : vector<1x512xf32>
    %147 = vector.extract_strided_slice %117 {offsets = [0, 5, 0], sizes = [1, 1, 10], strides = [1, 1, 1]} : vector<1x32x10xf32> to vector<1x1x10xf32>
    %148 = vector.shape_cast %147 : vector<1x1x10xf32> to vector<1x10xf32>
    %c5_103 = arith.constant 5 : index
    %c0_104 = arith.constant 0 : index
    %c0_105 = arith.constant 0 : index
    %149 = vector.load %arg8[%c5_103, %c0_104, %c0_105] : memref<6x10x512xf32, #tpu.memory_space<vmem>>, vector<1x10x512xf32>
    %150 = vector.shape_cast %149 : vector<1x10x512xf32> to vector<10x512xf32>
    %cst_106 = arith.constant dense<0.000000e+00> : vector<1x512xf32>
    %151 = tpu.matmul %148, %150, %cst_106 {dimension_numbers = #tpu.dot_dimension_numbers<[1], [0], [0], [1], [0, 0, 1, 1], [], []>} : vector<1x10xf32>, vector<10x512xf32>, vector<1x512xf32> -> vector<1x512xf32>
    %152 = arith.addf %146, %151 : vector<1x512xf32>
    %c0_107 = arith.constant 0 : index
    %c0_108 = arith.constant 0 : index
    %153 = vector.load %arg9[%c0_107, %c0_108] : memref<1x512xf32, #tpu.memory_space<vmem>>, vector<1x512xf32>
    %154 = arith.addf %152, %153 : vector<1x512xf32>
    %cst_109 = arith.constant 0.000000e+00 : f32
    %155 = vector.broadcast %cst_109 : f32 to vector<1x512xf32>
    %156 = arith.maximumf %154, %155 : vector<1x512xf32>
    %c0_110 = arith.constant 0 : index
    %c0_111 = arith.constant 0 : index
    %157 = vector.load %arg10[%c0_110, %c0_111] : memref<512x32xf32, #tpu.memory_space<vmem>>, vector<512x32xf32>
    %cst_112 = arith.constant dense<0.000000e+00> : vector<1x32xf32>
    %158 = tpu.matmul %156, %157, %cst_112 {dimension_numbers = #tpu.dot_dimension_numbers<[1], [0], [0], [1], [0, 0, 1, 1], [], []>} : vector<1x512xf32>, vector<512x32xf32>, vector<1x32xf32> -> vector<1x32xf32>
    %c0_113 = arith.constant 0 : index
    %c0_114 = arith.constant 0 : index
    %159 = vector.load %arg11[%c0_113, %c0_114] : memref<1x32xf32, #tpu.memory_space<vmem>>, vector<1x32xf32>
    %160 = arith.addf %158, %159 : vector<1x32xf32>
    %c0_115 = arith.constant 0 : index
    %c0_116 = arith.constant 0 : index
    %c0_117 = arith.constant 0 : index
    %161 = vector.load %arg12[%c0_115, %c0_116, %c0_117] : memref<1x1x32xf32, #tpu.memory_space<vmem>>, vector<1x1x32xf32>
    %162 = vector.shape_cast %161 : vector<1x1x32xf32> to vector<1x32xf32>
    %163 = vector.shape_cast %160 : vector<1x32xf32> to vector<1x1x32xf32>
    tpu.vector_store %arg12[%c0_115, %c0_116, %c0_117], %163 {strides = array<i32>} : memref<1x1x32xf32, #tpu.memory_space<vmem>>, vector<1x1x32xf32>,
    return
  }
  func.func @transform_0(%arg0: i32) -> (i32, i32, i32) {
    %c0_i32 = arith.constant 0 : i32
    %c0_i32_0 = arith.constant 0 : i32
    %c0_i32_1 = arith.constant 0 : i32
    return %arg0, %c0_i32, %c0_i32_0 : i32, i32, i32
  }
  func.func @transform_1(%arg0: i32) -> (i32, i32) {
    %c0_i32 = arith.constant 0 : i32
    %c0_i32_0 = arith.constant 0 : i32
    %c0_i32_1 = arith.constant 0 : i32
    return %c0_i32, %c0_i32_0 : i32, i32
  }
  func.func @transform_2(%arg0: i32) -> (i32, i32) {
    %c0_i32 = arith.constant 0 : i32
    %c0_i32_0 = arith.constant 0 : i32
    %c0_i32_1 = arith.constant 0 : i32
    return %c0_i32, %c0_i32_0 : i32, i32
  }
  func.func @transform_3(%arg0: i32) -> (i32, i32, i32) {
    %c0_i32 = arith.constant 0 : i32
    %c0_i32_0 = arith.constant 0 : i32
    %c0_i32_1 = arith.constant 0 : i32
    %c0_i32_2 = arith.constant 0 : i32
    return %c0_i32, %c0_i32_0, %c0_i32_1 : i32, i32, i32
  }
  func.func @transform_4(%arg0: i32) -> (i32, i32) {
    %c0_i32 = arith.constant 0 : i32
    %c0_i32_0 = arith.constant 0 : i32
    %c0_i32_1 = arith.constant 0 : i32
    return %c0_i32, %c0_i32_0 : i32, i32
  }
  func.func @transform_5(%arg0: i32) -> (i32, i32, i32) {
    %c0_i32 = arith.constant 0 : i32
    %c0_i32_0 = arith.constant 0 : i32
    %c0_i32_1 = arith.constant 0 : i32
    %c0_i32_2 = arith.constant 0 : i32
    return %c0_i32, %c0_i32_0, %c0_i32_1 : i32, i32, i32
  }
  func.func @transform_6(%arg0: i32) -> (i32, i32) {
    %c0_i32 = arith.constant 0 : i32
    %c0_i32_0 = arith.constant 0 : i32
    %c0_i32_1 = arith.constant 0 : i32
    return %c0_i32, %c0_i32_0 : i32, i32
  }
  func.func @transform_7(%arg0: i32) -> (i32, i32, i32) {
    %c0_i32 = arith.constant 0 : i32
    %c0_i32_0 = arith.constant 0 : i32
    %c0_i32_1 = arith.constant 0 : i32
    %c0_i32_2 = arith.constant 0 : i32
    return %c0_i32, %c0_i32_0, %c0_i32_1 : i32, i32, i32
  }
  func.func @transform_8(%arg0: i32) -> (i32, i32) {
    %c0_i32 = arith.constant 0 : i32
    %c0_i32_0 = arith.constant 0 : i32
    %c0_i32_1 = arith.constant 0 : i32
    return %c0_i32, %c0_i32_0 : i32, i32
  }
  func.func @transform_9(%arg0: i32) -> (i32, i32) {
    %c0_i32 = arith.constant 0 : i32
    %c0_i32_0 = arith.constant 0 : i32
    %c0_i32_1 = arith.constant 0 : i32
    return %c0_i32, %c0_i32_0 : i32, i32
  }
  func.func @transform_10(%arg0: i32) -> (i32, i32) {
    %c0_i32 = arith.constant 0 : i32
    %c0_i32_0 = arith.constant 0 : i32
    %c0_i32_1 = arith.constant 0 : i32
    return %c0_i32, %c0_i32_0 : i32, i32
  }
  func.func @transform_11(%arg0: i32) -> (i32, i32, i32) {
    %c0_i32 = arith.constant 0 : i32
    %c0_i32_0 = arith.constant 0 : i32
    %c0_i32_1 = arith.constant 0 : i32
    return %arg0, %c0_i32, %c0_i32_0 : i32, i32, i32
  }
}

</mosaic_0001>

<bundles_post_ra>
// kernel: cnn_encoder_pallas.1
= control target key start
LH: loop header
LB: loop body
LE: loop exit
PB: predicated region body
PF: predicated region fallthrough
CT: control target
= control target key end

     0   :  { %s2786_s17 = smov 0   ;;  %s3764_s0 = inlined_call_operand.vmem [shape: f32[2,50,72], index: 0, kind: input, shape index: {}]   ;;  %s3765_s1 = inlined_call_operand.vmem [shape: f32[72,9], index: 1, kind: input, shape index: {}]   ;;  %s3766_s2 = inlined_call_operand.vmem [shape: f32[1,9], index: 2, kind: input, shape index: {}]   ;;  %s3767_s3 = inlined_call_operand.vmem [shape: f32[9,9,9], index: 3, kind: input, shape index: {}]   ;;  %s3768_s4 = inlined_call_operand.vmem [shape: f32[1,9], index: 4, kind: input, shape index: {}]   ;;  %s3769_s5 = inlined_call_operand.vmem [shape: f32[11,9,10], index: 5, kind: input, shape index: {}]   ;;  %s3770_s6 = inlined_call_operand.vmem [shape: f32[1,10], index: 6, kind: input, shape index: {}]   ;;  %s3771_s7 = inlined_call_operand.vmem [shape: f32[6,10,512], index: 7, kind: input, shape index: {}]   ;;  %s3772_s8 = inlined_call_operand.vmem [shape: f32[1,512], index: 8, kind: input, shape index: {}]   ;;  %s3773_s9 = inlined_call_operand.vmem [shape: f32[512,32], index: 9, kind: input, shape index: {}]   ;;  %s3774_s10 = inlined_call_operand.vmem [shape: f32[1,32], index: 10, kind: input, shape index: {}]   ;;  %s3775_s11 = inlined_call_operand.vmem [shape: f32[2,1,32], index: 11, kind: output, shape index: {}]  }
   0x1 LB: > { %s2449_s18 = sadd.s32 4294967295, %s2724_s17   ;;  %p2453_p0 = scmp.ge.s32.totalorder %s2724_s17, 1  ;;  %s2724_s17 = sphi %s2786_s17, %s21_s17  }
   0x2   : > { %p337_p1 = scmp.lt.s32.totalorder %s2724_s17, 3 }
   0x4   : > { %p338_p2 = pnand %p2453_p0, %p337_p1 }
   0x5   : > { %p375_p3 = scmp.lt.s32.totalorder (!%p338_p2), %s2449_s18, 1 }
   0x6   : > { %341 = sbr.rel (%p338_p2) target bundleno = 968 (0x3c8), region = 64 }
   0xb   : > { %v398_v0 = vld [vmem:[%s3765_s1 + $0x40] sm:$0xff]  ;;  %v397_v1 = vld [vmem:[%s3765_s1 + $0x38] sm:$0xff]  ;;  %v396_v2 = vld [vmem:[%s3765_s1 + $0x30] sm:$0xff]  ;;  %s3777_s18 = smov (!%p375_p3, %s2449_s18), 1  ;;  %vm403_vm0 = vcmask 588800   ;;  %vm506_vm1 = vcmask 1040384  }
   0xc   : > { %432 = vmatpush.msra.mxu0 %v398_v0  ;;  %v395_v3 = vld [vmem:[%s3765_s1 + $0x28] sm:$0xff]  ;;  %v394_v4 = vld [vmem:[%s3765_s1 + $0x20] sm:$0xff]  ;;  %v393_v5 = vld [vmem:[%s3765_s1 + $0x18] sm:$0xff]  ;;  %s2706_s12 = smul.u32 56, %s3777_s18  ;;  %vm493_vm2 = vcmask 72704   ;;  %vm481_vm3 = vcmask 1046528   ;;  %s382_s15 = scalar_lea.vmem %s3775_s11, %s3777_s18 }
   0xd   : > { %v392_v6 = vld [vmem:[%s3765_s1 + $0x10] sm:$0xff]  ;;  %v391_v7 = vld [vmem:[%s3765_s1 + $0x8] sm:$0xff]  ;;  %v390_v8 = vld [vmem:[%s3765_s1] sm:$0xff]  ;;  %vm598_vm4 = vcmask 1045504   ;;  %vm882_vm5 = vcmask 1041408   ;;  %vm740_vm6 = vcmask 1043456  }
   0xe   : > { %433 = vmatpush.msra.mxu0 %v397_v1  ;;  %s379_s21 = scalar_lea.vmem %s3764_s0, %s2706_s12  ;;  %v471_v16 = vld [vmem:[%s3767_s3 + $0x8] sm:$0x1]  ;;  %v470_v17 = vld [vmem:[%s3767_s3] sm:$0xff]  ;;  %v2463_v19 = vld [vmem:[%s3767_s3 + $0x18] sm:$0x1]  ;;  %vm669_vm7 = vcmask 1044480  }
   0xf   : > { %v383_v9 = vld [vmem:[%s379_s21] sm:$0xff]  ;;  %v384_v10 = vld [vmem:[%s379_s21 + $0x8] sm:$0xff]  ;;  %v385_v11 = vld [vmem:[%s379_s21 + $0x10] sm:$0xff]  ;;  %2471 = vmatpush.msk.msra.mxu2 %vm506_vm1, %v471_v16  ;;  %2464 = vmatpush.msk.msra.mxu1 %vm506_vm1, %v2463_v19  ;;  %vm811_vm8 = vcmask 1042432   ;;  %vm1616_vm9 = vcmask 80896   ;;  %vm2400_vm10 = vcmask 253952  }
  0x10   : > { %434 = vmatpush.msra.mxu0 %v396_v2  ;;  %v386_v12 = vld [vmem:[%s379_s21 + $0x18] sm:$0xff]  ;;  %v387_v13 = vld [vmem:[%s379_s21 + $0x20] sm:$0xff]  ;;  %v388_v14 = vld [vmem:[%s379_s21 + $0x28] sm:$0xff] }
  0x11   : > { %v389_v15 = vld [vmem:[%s379_s21 + $0x30] sm:$0x3]  ;;  %575 = vmatpush.msra.mxu2 %v470_v17  ;;  %v2497_v18 = vld [vmem:[%s3767_s3 + $0x48] sm:$0x1]  ;;  %v2478_v23 = vld [vmem:[%s3767_s3 + $0x20] sm:$0xff] }
  0x12   : > { %435 = vmatpush.msra.mxu0 %v395_v3  ;;  %v2479_v20 = vld [vmem:[%s3767_s3 + $0x28] sm:$0x1]  ;;  %v2462_v22 = vld [vmem:[%s3767_s3 + $0x10] sm:$0xff]  ;;  %v2514_v24 = vld [vmem:[%s3767_s3 + $0x60] sm:$0xff] }
  0x13   : > { %2498 = vmatpush.msk.msrb.mxu2 %vm506_vm1, %v2497_v18  ;;  %v2515_v21 = vld [vmem:[%s3767_s3 + $0x68] sm:$0x1]  ;;  %2480 = vmatpush.msk.msra.mxu3 %vm506_vm1, %v2479_v20  ;;  %v2488_v25 = vld [vmem:[%s3767_s3 + $0x38] sm:$0x1]  ;;  %v2866_v26 = vld [vmem:[%s3766_s2] ss:$0 sm:$0xff] }
  0x14   : > { %436 = vmatpush.msra.mxu0 %v394_v4  ;;  %525 = vmatpush.msra.mxu1 %v2462_v22  ;;  %v2496_v30 = vld [vmem:[%s3767_s3 + $0x40] sm:$0xff]  ;;  %v2487_v34 = vld [vmem:[%s3767_s3 + $0x30] sm:$0xff]  ;;  %v2506_v50 = vld [vmem:[%s3767_s3 + $0x58] sm:$0x1] }
  0x15   : > { %640 = vmatpush.msra.mxu3 %v2478_v23  ;;  %782 = vmatpush.msrb.mxu2 %v2496_v30  ;;  %v2533_v56 = vld [vmem:[%s3767_s3 + $0x88] sm:$0x1]  ;;  %v2505_v61 = vld [vmem:[%s3767_s3 + $0x50] sm:$0xff]  ;;  %v2524_v2 = vld [vmem:[%s3767_s3 + $0x78] sm:$0x1] }
  0x16   : > { %437 = vmatpush.msra.mxu0 %v393_v5  ;;  %2489 = vmatpush.msk.msrb.mxu1 %vm506_vm1, %v2488_v25  ;;  %v2523_v25 = vld [vmem:[%s3767_s3 + $0x70] sm:$0xff] }
  0x17   : > { %2507 = vmatpush.msk.msrb.mxu3 %vm506_vm1, %v2506_v50 }
  0x18   : > { %438 = vmatpush.msra.mxu0 %v392_v6  ;;  %711 = vmatpush.msrb.mxu1 %v2487_v34 }
  0x19   : > { %853 = vmatpush.msrb.mxu3 %v2505_v61 }
  0x1a   : > { %439 = vmatpush.msra.mxu0 %v391_v7 }
  0x1c   : > { %440 = vmatpush.msra.mxu0 %v390_v8 }
  0x1d   : > { %2455 = vmatmul.msk.f32.vlgmr.msra.gmra.mxu0 %vm403_vm0, %v383_v9 }
  0x1e   : > { %2516 = vmatpush.msk.msrb.mxu0 %vm506_vm1, %v2515_v21  ;;  %v2532_v21 = vld [vmem:[%s3767_s3 + $0x80] sm:$0xff] }
  0x20   : > { %924 = vmatpush.msrb.mxu0 %v2514_v24 }
  0x25   : > { %2456 = vmatmul.msk.f32.gmra.mxu0 %vm403_vm0, %v384_v10 }
  0x2d   : > { %2457 = vmatmul.msk.f32.gmra.mxu0 %vm403_vm0, %v385_v11 }
  0x35   : > { %2458 = vmatmul.msk.f32.gmra.mxu0 %vm403_vm0, %v386_v12 }
  0x3d   : > { %2459 = vmatmul.msk.f32.gmra.mxu0 %vm403_vm0, %v387_v13 }
  0x45   : > { %2460 = vmatmul.msk.f32.gmra.mxu0 %vm403_vm0, %v388_v14 }
  0x4d   : > { %2461 = vmatmul.msk.f32.gmra.mxu0 %vm403_vm0, %v389_v15 }
  0x9a   : > { %v442_v27 = vpop.f32.mrf.mxu0 }
  0x9b   : > { %v443_v28 = vadd.f32 %v2866_v26, %v442_v27 }
  0x9d   : > { %v2869_v29 = vmax.f32 %v443_v28, 0.0 }
  0x9f   : > { %2472 = vmatmul.msk.f32.vlgmr.msra.gmra.mxu2 %vm493_vm2, %v2869_v29  ;;  %v482_v35 = vrot.slane %v2869_v29, 1  ;;  %v599_v36 = vrot.slane %v2869_v29, 2  ;;  %v883_v39 = vrot.slane %v2869_v29, 6  ;;  %v741_v22 = vrot.slane %v2869_v29, 4 }
  0xa0   : > { %2534 = vmatpush.msk.msra.mxu2 %vm506_vm1, %v2533_v56  ;;  %v954_v61 = vrot.slane %v2869_v29, 7 }
  0xa2   : > { %v445_v31 = vpop.f32.mrf.mxu0  ;;  %1046 = vmatpush.msra.mxu2 %v2532_v21 }
  0xa3   : > { %v446_v32 = vadd.f32 %v2866_v26, %v445_v31  ;;  %v670_v31 = vrot.slane %v2869_v29, 3 }
  0xa5   : > { %v2877_v33 = vmax.f32 %v446_v32, 0.0  ;;  %v812_v32 = vrot.slane %v2869_v29, 5 }
  0xa7   : > { %2473 = vmatmul.msk.f32.gmra.mxu2 %vm493_vm2, %v2877_v33  ;;  %v483_v37 = vrot.slane %v2877_v33, 1  ;;  %v600_v38 = vrot.slane %v2877_v33, 2  ;;  %v884_v40 = vrot.slane %v2877_v33, 6  ;;  %v742_v20 = vrot.slane %v2877_v33, 4 }
  0xa8   : > { %v671_v27 = vrot.slane %v2877_v33, 3  ;;  %v813_v28 = vrot.slane %v2877_v33, 5 }
  0xa9   : > { %v484_v41 = vsel %vm481_vm3, %v482_v35, %v483_v37  ;;  %v601_v42 = vsel %vm598_vm4, %v599_v36, %v600_v38  ;;  %v885_v43 = vsel %vm882_vm5, %v883_v39, %v884_v40  ;;  %v743_v23 = vsel %vm740_vm6, %v741_v22, %v742_v20 }
  0xaa   : > { %v448_v44 = vpop.f32.mrf.mxu0  ;;  %2465 = vmatmul.msk.f32.vlgmr.msra.gmra.mxu1 %vm493_vm2, %v484_v41  ;;  %2481 = vmatmul.msk.f32.vlgmr.msra.gmra.mxu3 %vm493_vm2, %v601_v42  ;;  %v672_v34 = vsel %vm669_vm7, %v670_v31, %v671_v27  ;;  %v814_v35 = vsel %vm811_vm8, %v812_v32, %v813_v28  ;;  %v2541_v32 = vld [vmem:[%s3769_s5 + $0x10] sm:$0xff] }
  0xab   : > { %v449_v45 = vadd.f32 %v2866_v26, %v448_v44  ;;  %2517 = vmatmul.msk.f32.vlgmr.msrb.gmra.mxu0 %vm493_vm2, %v885_v43  ;;  %2525 = vmatpush.msk.msra.mxu1 %vm506_vm1, %v2524_v2 }
  0xad   : > { %v2897_v46 = vmax.f32 %v449_v45, 0.0  ;;  %997 = vmatpush.msra.mxu1 %v2523_v25 }
  0xaf   : > { %2474 = vmatmul.msk.f32.gmra.mxu2 %vm493_vm2, %v2897_v46  ;;  %v485_v47 = vrot.slane %v2897_v46, 1  ;;  %v602_v48 = vrot.slane %v2897_v46, 2  ;;  %v886_v49 = vrot.slane %v2897_v46, 6  ;;  %v744_v24 = vrot.slane %v2897_v46, 4 }
  0xb1   : > { %v486_v51 = vsel %vm481_vm3, %v483_v37, %v485_v47  ;;  %v603_v52 = vsel %vm598_vm4, %v600_v38, %v602_v48  ;;  %v887_v53 = vsel %vm882_vm5, %v884_v40, %v886_v49  ;;  %v745_v30 = vsel %vm740_vm6, %v742_v20, %v744_v24  ;;  %v2542_v20 = vld [vmem:[%s3769_s5 + $0x18] sm:$0x1] }
  0xb2   : > { %v451_v54 = vpop.f32.mrf.mxu0  ;;  %2466 = vmatmul.msk.f32.gmra.mxu1 %vm493_vm2, %v486_v51  ;;  %2482 = vmatmul.msk.f32.gmra.mxu3 %vm493_vm2, %v603_v52  ;;  %v673_v37 = vrot.slane %v2897_v46, 3  ;;  %v815_v38 = vrot.slane %v2897_v46, 5 }
  0xb3   : > { %v452_v55 = vadd.f32 %v2866_v26, %v451_v54  ;;  %2518 = vmatmul.msk.f32.gmra.mxu0 %vm493_vm2, %v887_v53  ;;  %2543 = vmatpush.msk.msra.mxu3 %vm506_vm1, %v2542_v20 }
  0xb4   : > { %v674_v40 = vsel %vm669_vm7, %v671_v27, %v673_v37  ;;  %v816_v41 = vsel %vm811_vm8, %v813_v28, %v815_v38 }
  0xb5   : > { %v2919_v57 = vmax.f32 %v452_v55, 0.0  ;;  %1133 = vmatpush.msra.mxu3 %v2541_v32 }
  0xb7   : > { %2475 = vmatmul.msk.f32.gmra.mxu2 %vm493_vm2, %v2919_v57  ;;  %v487_v58 = vrot.slane %v2919_v57, 1  ;;  %v604_v59 = vrot.slane %v2919_v57, 2  ;;  %v888_v60 = vrot.slane %v2919_v57, 6  ;;  %v746_v36 = vrot.slane %v2919_v57, 4 }
  0xb8   : > { %v675_v43 = vrot.slane %v2919_v57, 3  ;;  %v817_v44 = vrot.slane %v2919_v57, 5 }
  0xb9   : > { %v488_v62 = vsel %vm481_vm3, %v485_v47, %v487_v58  ;;  %v605_v63 = vsel %vm598_vm4, %v602_v48, %v604_v59  ;;  %v889_v0 = vsel %vm882_vm5, %v886_v49, %v888_v60  ;;  %v747_v39 = vsel %vm740_vm6, %v744_v24, %v746_v36 }
  0xba   : > { %v454_v1 = vpop.f32.mrf.mxu0  ;;  %2467 = vmatmul.msk.f32.gmra.mxu1 %vm493_vm2, %v488_v62  ;;  %2483 = vmatmul.msk.f32.gmra.mxu3 %vm493_vm2, %v605_v63  ;;  %v676_v47 = vsel %vm669_vm7, %v673_v37, %v675_v43  ;;  %v818_v48 = vsel %vm811_vm8, %v815_v38, %v817_v44  ;;  %v957_v63 = vrot.slane %v2897_v46, 7  ;;  %v1089_v37 = vld [vmem:[%s3769_s5 + $0x8] sm:$0x1] }
  0xbb   : > { %v455_v3 = vadd.f32 %v2866_v26, %v454_v1  ;;  %2519 = vmatmul.msk.f32.gmra.mxu0 %vm493_vm2, %v889_v0 }
  0xbc   : > { %2548 = vmatpush.msk.msra.mxu0 %vm506_vm1, %v1089_v37 }
  0xbd   : > { %v2940_v4 = vmax.f32 %v455_v3, 0.0 }
  0xbf   : > { %2476 = vmatmul.msk.f32.gmra.mxu2 %vm493_vm2, %v2940_v4  ;;  %v489_v5 = vrot.slane %v2940_v4, 1  ;;  %v606_v6 = vrot.slane %v2940_v4, 2  ;;  %v890_v7 = vrot.slane %v2940_v4, 6  ;;  %v748_v42 = vrot.slane %v2940_v4, 4 }
  0xc0   : > { %v677_v50 = vrot.slane %v2940_v4, 3  ;;  %v819_v51 = vrot.slane %v2940_v4, 5  ;;  %v961_v1 = vrot.slane %v2940_v4, 7 }
  0xc1   : > { %v490_v8 = vsel %vm481_vm3, %v487_v58, %v489_v5  ;;  %v607_v9 = vsel %vm598_vm4, %v604_v59, %v606_v6  ;;  %v891_v10 = vsel %vm882_vm5, %v888_v60, %v890_v7  ;;  %v749_v45 = vsel %vm740_vm6, %v746_v36, %v748_v42 }
  0xc2   : > { %v457_v11 = vpop.f32.mrf.mxu0  ;;  %2468 = vmatmul.msk.f32.gmra.mxu1 %vm493_vm2, %v490_v8  ;;  %2484 = vmatmul.msk.f32.gmra.mxu3 %vm493_vm2, %v607_v9  ;;  %v678_v53 = vsel %vm669_vm7, %v675_v43, %v677_v50  ;;  %v820_v54 = vsel %vm811_vm8, %v817_v44, %v819_v51  ;;  %v955_v60 = vrot.slane %v2877_v33, 7  ;;  %v2561_v44 = vld [vmem:[%s3769_s5 + $0x38] sm:$0x1] }
  0xc3   : > { %v458_v12 = vadd.f32 %v2866_v26, %v457_v11  ;;  %2520 = vmatmul.msk.f32.gmra.mxu0 %vm493_vm2, %v891_v10 }
  0xc4   : > { %v956_v62 = vsel %vm506_vm1, %v954_v61, %v955_v60  ;;  %v958_v0 = vsel %vm506_vm1, %v955_v60, %v957_v63 }
  0xc5   : > { %v2954_v13 = vmax.f32 %v458_v12, 0.0 }
  0xc7   : > { %2477 = vmatmul.msk.f32.gmra.mxu2 %vm493_vm2, %v2954_v13  ;;  %v491_v14 = vrot.slane %v2954_v13, 1  ;;  %v608_v15 = vrot.slane %v2954_v13, 2  ;;  %v892_v16 = vrot.slane %v2954_v13, 6  ;;  %v750_v49 = vrot.slane %v2954_v13, 4 }
  0xc8   : > { %v679_v55 = vrot.slane %v2954_v13, 3  ;;  %v821_v56 = vrot.slane %v2954_v13, 5 }
  0xc9   : > { %v492_v17 = vsel %vm481_vm3, %v489_v5, %v491_v14  ;;  %v609_v18 = vsel %vm598_vm4, %v606_v6, %v608_v15  ;;  %v893_v19 = vsel %vm882_vm5, %v890_v7, %v892_v16  ;;  %v751_v52 = vsel %vm740_vm6, %v748_v42, %v750_v49 }
  0xca   : > { %2469 = vmatmul.msk.f32.gmra.mxu1 %vm493_vm2, %v492_v17  ;;  %2485 = vmatmul.msk.f32.gmra.mxu3 %vm493_vm2, %v609_v18  ;;  %v680_v58 = vsel %vm669_vm7, %v677_v50, %v679_v55  ;;  %v822_v59 = vsel %vm811_vm8, %v819_v51, %v821_v56  ;;  %v460_v2 = vpop.f32.mrf.mxu0  ;;  %v963_v6 = vrot.slane %v2954_v13, 7  ;;  %v2567_v50 = vld [vmem:[%s3769_s5 + $0x40] sm:$0xff] }
  0xcb   : > { %2521 = vmatmul.msk.f32.gmra.mxu0 %vm493_vm2, %v893_v19 }
  0xcc   : > { %v964_v8 = vsel %vm506_vm1, %v961_v1, %v963_v6 }
  0xcf   : > { %2499 = vmatmul.msk.f32.vlgmr.msrb.gmra.mxu2 %vm493_vm2, %v743_v23 }
  0xd2   : > { %2470 = vmatmul.msk.f32.gmra.mxu1 %vm493_vm2, %v491_v14  ;;  %2486 = vmatmul.msk.f32.gmra.mxu3 %vm493_vm2, %v608_v15 }
  0xd3   : > { %2522 = vmatmul.msk.f32.gmra.mxu0 %vm493_vm2, %v892_v16 }
  0xd7   : > { %2500 = vmatmul.msk.f32.gmra.mxu2 %vm493_vm2, %v745_v30 }
  0xda   : > { %2490 = vmatmul.msk.f32.vlgmr.msrb.gmra.mxu1 %vm493_vm2, %v672_v34  ;;  %2508 = vmatmul.msk.f32.vlgmr.msrb.gmra.mxu3 %vm493_vm2, %v814_v35 }
  0xdb   : > { %2562 = vmatpush.msk.msrb.mxu1 %vm506_vm1, %v2561_v44 }
  0xdf   : > { %2501 = vmatmul.msk.f32.gmra.mxu2 %vm493_vm2, %v747_v39  ;;  %v1088_v39 = vld [vmem:[%s3769_s5] sm:$0xff] }
  0xe0   : > { %1170 = vmatpush.msra.mxu0 %v1088_v39 }
  0xe2   : > { %2491 = vmatmul.msk.f32.gmra.mxu1 %vm493_vm2, %v674_v40  ;;  %2509 = vmatmul.msk.f32.gmra.mxu3 %vm493_vm2, %v816_v41 }
  0xe7   : > { %2502 = vmatmul.msk.f32.gmra.mxu2 %vm493_vm2, %v749_v45  ;;  %v2568_v45 = vld [vmem:[%s3769_s5 + $0x48] sm:$0x1] }
  0xe8   : > { %2569 = vmatpush.msk.msrb.mxu2 %vm506_vm1, %v2568_v45 }
  0xea   : > { %2492 = vmatmul.msk.f32.gmra.mxu1 %vm493_vm2, %v676_v47  ;;  %2510 = vmatmul.msk.f32.gmra.mxu3 %vm493_vm2, %v818_v48 }
  0xeb   : > { %1319 = vmatpush.msrb.mxu2 %v2567_v50 }
  0xef   : > { %2503 = vmatmul.msk.f32.gmra.mxu2 %vm493_vm2, %v751_v52 }
  0xf2   : > { %2493 = vmatmul.msk.f32.gmra.mxu1 %vm493_vm2, %v678_v53  ;;  %2511 = vmatmul.msk.f32.gmra.mxu3 %vm493_vm2, %v820_v54 }
  0xf7   : > { %2504 = vmatmul.msk.f32.gmra.mxu2 %vm493_vm2, %v750_v49  ;;  %v2560_v49 = vld [vmem:[%s3769_s5 + $0x30] sm:$0xff] }
  0xf8   : > { %1269 = vmatpush.msrb.mxu1 %v2560_v49 }
  0xfa   : > { %2494 = vmatmul.msk.f32.gmra.mxu1 %vm493_vm2, %v680_v58  ;;  %2512 = vmatmul.msk.f32.gmra.mxu3 %vm493_vm2, %v822_v59 }
  0xff   : > { %2535 = vmatmul.msk.f32.vlgmr.msra.gmra.mxu2 %vm493_vm2, %v2877_v33  ;;  %v959_v33 = vrot.slane %v2919_v57, 7 }
 0x101   : > { %v960_v29 = vsel %vm506_vm1, %v957_v63, %v959_v33  ;;  %v962_v3 = vsel %vm506_vm1, %v959_v33, %v961_v1 }
 0x102   : > { %2495 = vmatmul.msk.f32.gmra.mxu1 %vm493_vm2, %v679_v55  ;;  %2513 = vmatmul.msk.f32.gmra.mxu3 %vm493_vm2, %v821_v56  ;;  %v2554_v56 = vld [vmem:[%s3769_s5 + $0x28] sm:$0x1] }
 0x103   : > { %2555 = vmatpush.msk.msrb.mxu3 %vm506_vm1, %v2554_v56 }
 0x107   : > { %2536 = vmatmul.msk.f32.gmra.mxu2 %vm493_vm2, %v2897_v46  ;;  %v461_v46 = vadd.f32 %v2866_v26, %v460_v2 }
 0x10a   : > { %2526 = vmatmul.msk.f32.vlgmr.msra.gmra.mxu1 %vm493_vm2, %v956_v62 }
 0x10f   : > { %2537 = vmatmul.msk.f32.gmra.mxu2 %vm493_vm2, %v2919_v57  ;;  %v469_v57 = vmax.f32 %v461_v46, 0.0 }
 0x111   : > { %v965_v9 = vrot.slane %v469_v57, 7 }
 0x112   : > { %2527 = vmatmul.msk.f32.gmra.mxu1 %vm493_vm2, %v958_v0 }
 0x113   : > { %v966_v26 = vsel %vm506_vm1, %v963_v6, %v965_v9 }
 0x117   : > { %2538 = vmatmul.msk.f32.gmra.mxu2 %vm493_vm2, %v2940_v4 }
 0x11a   : > { %2528 = vmatmul.msk.f32.gmra.mxu1 %vm493_vm2, %v960_v29 }
 0x11f   : > { %2539 = vmatmul.msk.f32.gmra.mxu2 %vm493_vm2, %v2954_v13 }
 0x122   : > { %v577_v5 = vpop.f32.mrf.mxu2  ;;  %2529 = vmatmul.msk.f32.gmra.mxu1 %vm493_vm2, %v962_v3 }
 0x127   : > { %v527_v7 = vpop.f32.mrf.mxu1  ;;  %2540 = vmatmul.msk.f32.gmra.mxu2 %vm493_vm2, %v469_v57 }
 0x128   : > { %v578_v43 = vadd.f32 %v577_v5, %v527_v7  ;;  %v926_v51 = vpop.f32.mrf.mxu0  ;;  %v3119_v7 = vld [vmem:[%s3768_s4] ss:$0 sm:$0xff] }
 0x12a   : > { %v580_v4 = vpop.f32.mrf.mxu2  ;;  %2530 = vmatmul.msk.f32.gmra.mxu1 %vm493_vm2, %v964_v8 }
 0x12d   : > { %v642_v14 = vpop.f32.mrf.mxu3 }
 0x12e   : > { %v660_v47 = vadd.f32 %v642_v14, %v578_v43 }
 0x12f   : > { %v530_v10 = vpop.f32.mrf.mxu1 }
 0x130   : > { %v581_v59 = vadd.f32 %v580_v4, %v530_v10  ;;  %v929_v1 = vpop.f32.mrf.mxu0 }
 0x132   : > { %v3056_v11 = vpop.f32.mrf.mxu2  ;;  %2531 = vmatmul.msk.f32.gmra.mxu1 %vm493_vm2, %v966_v26 }
 0x135   : > { %v645_v16 = vpop.f32.mrf.mxu3 }
 0x136   : > { %v661_v62 = vadd.f32 %v645_v16, %v581_v59  ;;  %v2575_v16 = vld [vmem:[%s3769_s5 + $0x58] sm:$0x1] }
 0x137   : > { %v533_v12 = vpop.f32.mrf.mxu1  ;;  %2576 = vmatpush.msk.msrb.mxu0 %vm506_vm1, %v2575_v16 }
 0x138   : > { %v584_v3 = vadd.f32 %v3056_v11, %v533_v12  ;;  %v932_v20 = vpop.f32.mrf.mxu0 }
 0x13a   : > { %v3059_v15 = vpop.f32.mrf.mxu2 }
 0x13d   : > { %v648_v21 = vpop.f32.mrf.mxu3 }
 0x13e   : > { %v662_v8 = vadd.f32 %v648_v21, %v584_v3 }
 0x13f   : > { %v3061_v13 = vpop.f32.mrf.mxu1 }
 0x140   : > { %v587_v21 = vadd.f32 %v3059_v15, %v3061_v13  ;;  %v935_v49 = vpop.f32.mrf.mxu0 }
 0x142   : > { %v3063_v17 = vpop.f32.mrf.mxu2 }
 0x145   : > { %v3071_v24 = vpop.f32.mrf.mxu3 }
 0x147   : > { %v3065_v18 = vpop.f32.mrf.mxu1 }
 0x148   : > { %v590_v39 = vadd.f32 %v3063_v17, %v3065_v18  ;;  %v938_v16 = vpop.f32.mrf.mxu0 }
 0x14a   : > { %v592_v19 = vpop.f32.mrf.mxu2 }
 0x14d   : > { %v3073_v30 = vpop.f32.mrf.mxu3 }
 0x14e   : > { %v664_v50 = vadd.f32 %v3073_v30, %v590_v39  ;;  %v2595_v30 = vld [vmem:[%s3769_s5 + $0x80] sm:$0xff] }
 0x14f   : > { %v542_v22 = vpop.f32.mrf.mxu1 }
 0x150   : > { %v593_v52 = vadd.f32 %v592_v19, %v542_v22  ;;  %v2553_v19 = vld [vmem:[%s3769_s5 + $0x20] sm:$0xff] }
 0x151   : > { %1219 = vmatpush.msrb.mxu3 %v2553_v19 }
 0x152   : > { %v784_v23 = vpop.f32.mrf.mxu2 }
 0x155   : > { %v657_v35 = vpop.f32.mrf.mxu3 }
 0x156   : > { %v665_v54 = vadd.f32 %v657_v35, %v593_v52  ;;  %v2596_v52 = vld [vmem:[%s3769_s5 + $0x88] sm:$0x1] }
 0x157   : > { %v713_v25 = vpop.f32.mrf.mxu1  ;;  %2597 = vmatpush.msk.msra.mxu2 %vm506_vm1, %v2596_v52 }
 0x158   : > { %v731_v53 = vadd.f32 %v713_v25, %v660_v47 }
 0x159   : > { %1504 = vmatpush.msra.mxu2 %v2595_v30 }
 0x15a   : > { %v787_v27 = vpop.f32.mrf.mxu2  ;;  %v802_v60 = vadd.f32 %v784_v23, %v731_v53  ;;  %v2574_v23 = vld [vmem:[%s3769_s5 + $0x50] sm:$0xff] }
 0x15b   : > { %1369 = vmatpush.msrb.mxu0 %v2574_v23  ;;  %v2588_v53 = vld [vmem:[%s3769_s5 + $0x70] sm:$0xff] }
 0x15d   : > { %v855_v41 = vpop.f32.mrf.mxu3 }
 0x15e   : > { %v873_v63 = vadd.f32 %v855_v41, %v802_v60  ;;  %v2582_v60 = vld [vmem:[%s3769_s5 + $0x68] sm:$0x1] }
 0x15f   : > { %v716_v28 = vpop.f32.mrf.mxu1 }
 0x160   : > { %v732_v29 = vadd.f32 %v716_v28, %v661_v62  ;;  %v944_v2 = vadd.f32 %v926_v51, %v873_v63  ;;  %v663_v28 = vadd.f32 %v3071_v24, %v587_v21 }
 0x162   : > { %v3075_v31 = vpop.f32.mrf.mxu2  ;;  %v803_v5 = vadd.f32 %v787_v27, %v732_v29 }
 0x165   : > { %v858_v55 = vpop.f32.mrf.mxu3 }
 0x166   : > { %v874_v4 = vadd.f32 %v858_v55, %v803_v5 }
 0x167   : > { %v719_v34 = vpop.f32.mrf.mxu1 }
 0x168   : > { %v733_v26 = vadd.f32 %v719_v34, %v662_v8  ;;  %v945_v12 = vadd.f32 %v929_v1, %v874_v4 }
 0x16a   : > { %v3080_v36 = vpop.f32.mrf.mxu2  ;;  %v804_v25 = vadd.f32 %v3075_v31, %v733_v26 }
 0x16d   : > { %v861_v57 = vpop.f32.mrf.mxu3 }
 0x16e   : > { %v875_v32 = vadd.f32 %v861_v57, %v804_v25 }
 0x16f   : > { %v3086_v38 = vpop.f32.mrf.mxu1 }
 0x170   : > { %v734_v15 = vadd.f32 %v3086_v38, %v663_v28  ;;  %v946_v31 = vadd.f32 %v932_v20, %v875_v32 }
 0x172   : > { %v3091_v40 = vpop.f32.mrf.mxu2  ;;  %v805_v43 = vadd.f32 %v3080_v36, %v734_v15  ;;  %v2589_v36 = vld [vmem:[%s3769_s5 + $0x78] sm:$0x1] }
 0x173   : > { %2590 = vmatpush.msk.msra.mxu1 %vm506_vm1, %v2589_v36 }
 0x175   : > { %v864_v34 = vpop.f32.mrf.mxu3  ;;  %1469 = vmatpush.msra.mxu1 %v2588_v53 }
 0x176   : > { %v876_v51 = vadd.f32 %v864_v34, %v805_v43 }
 0x177   : > { %v3093_v42 = vpop.f32.mrf.mxu1 }
 0x178   : > { %v735_v59 = vadd.f32 %v3093_v42, %v664_v50 }
 0x17a   : > { %v799_v48 = vpop.f32.mrf.mxu2 }
 0x17d   : > { %v867_v63 = vpop.f32.mrf.mxu3 }
 0x17f   : > { %v728_v58 = vpop.f32.mrf.mxu1 }
 0x180   : > { %v736_v61 = vadd.f32 %v728_v58, %v665_v54 }
 0x182   : > { %v1048_v0 = vpop.f32.mrf.mxu2  ;;  %v3113_v33 = vadd.f32 %v799_v48, %v736_v61 }
 0x185   : > { %v870_v20 = vpop.f32.mrf.mxu3 }
 0x187   : > { %v999_v46 = vpop.f32.mrf.mxu1 }
 0x188   : > { %v1017_v6 = vadd.f32 %v999_v46, %v944_v2  ;;  %v947_v2 = vadd.f32 %v935_v49, %v876_v51  ;;  %v806_v46 = vadd.f32 %v3091_v40, %v735_v59 }
 0x18a   : > { %v1066_v9 = vadd.f32 %v1048_v0, %v1017_v6  ;;  %v1051_v10 = vpop.f32.mrf.mxu2  ;;  %v877_v4 = vadd.f32 %v867_v63, %v806_v46 }
 0x18c   : > { %v1076_v14 = vadd.f32 %v3119_v7, %v1066_v9 }
 0x18e   : > { %v3125_v11 = vmax.f32 %v1076_v14, 0.0 }
 0x18f   : > { %v1002_v22 = vpop.f32.mrf.mxu1 }
 0x190   : > { %v1018_v27 = vadd.f32 %v1002_v22, %v945_v12  ;;  %2549 = vmatmul.msk.f32.vlgmr.msra.gmra.mxu0 %vm493_vm2, %v3125_v11  ;;  %v1098_v24 = vrot.slane %v3125_v11, 1  ;;  %v1234_v45 = vrot.slane %v3125_v11, 3  ;;  %v1284_v47 = vrot.slane %v3125_v11, 4 }
 0x191   : > { %v1384_v61 = vrot.slane %v3125_v11, 6  ;;  %v948_v22 = vadd.f32 %v938_v16, %v877_v4 }
 0x192   : > { %v1067_v35 = vadd.f32 %v1051_v10, %v1018_v27  ;;  %v1054_v13 = vpop.f32.mrf.mxu2 }
 0x194   : > { %v1077_v37 = vadd.f32 %v3119_v7, %v1067_v35  ;;  %v878_v35 = vadd.f32 %v870_v20, %v3113_v33  ;;  %v2581_v33 = vld [vmem:[%s3769_s5 + $0x60] sm:$0xff] }
 0x196   : > { %v3144_v41 = vmax.f32 %v1077_v37, 0.0 }
 0x197   : > { %v1005_v44 = vpop.f32.mrf.mxu1 }
 0x198   : > { %v1019_v48 = vadd.f32 %v1005_v44, %v946_v31  ;;  %2550 = vmatmul.msk.f32.gmra.mxu0 %vm493_vm2, %v3144_v41  ;;  %v1099_v38 = vrot.slane %v3144_v41, 1  ;;  %v1235_v17 = vrot.slane %v3144_v41, 3  ;;  %v1285_v18 = vrot.slane %v3144_v41, 4 }
 0x199   : > { %v1385_v62 = vrot.slane %v3144_v41, 6  ;;  %v1335_v43 = vrot.slane %v3144_v41, 5 }
 0x19a   : > { %v1068_v54 = vadd.f32 %v1054_v13, %v1019_v48  ;;  %v1100_v55 = vsel %vm481_vm3, %v1098_v24, %v1099_v38  ;;  %v1236_v56 = vsel %vm669_vm7, %v1234_v45, %v1235_v17  ;;  %v1286_v58 = vsel %vm740_vm6, %v1284_v47, %v1285_v18  ;;  %v1057_v29 = vpop.f32.mrf.mxu2  ;;  %v2603_v24 = vld [vmem:[%s3769_s5 + $0x98] sm:$0x1]  ;;  %v2602_v45 = vld [vmem:[%s3769_s5 + $0x90] sm:$0xff]  ;;  %v941_v48 = vpop.f32.mrf.mxu0 }
 0x19b   : > { %2544 = vmatmul.msk.f32.vlgmr.msra.gmra.mxu3 %vm493_vm2, %v1100_v55  ;;  %2563 = vmatmul.msk.f32.vlgmr.msrb.gmra.mxu1 %vm493_vm2, %v1236_v56  ;;  %v3185_v42 = vsel %vm882_vm5, %v1384_v61, %v1385_v62 }
 0x19c   : > { %v1078_v0 = vadd.f32 %v3119_v7, %v1068_v54  ;;  %2570 = vmatmul.msk.f32.vlgmr.msrb.gmra.mxu2 %vm493_vm2, %v1286_v58  ;;  %2583 = vmatpush.msk.msra.mxu3 %vm506_vm1, %v2582_v60 }
 0x19d   : > { %2604 = vmatpush.msk.msra.mxu0 %vm506_vm1, %v2603_v24 }
 0x19e   : > { %v3187_v1 = vmax.f32 %v1078_v0, 0.0  ;;  %1419 = vmatpush.msra.mxu3 %v2581_v33  ;;  %v1185_v0 = vrot.slane %v3144_v41, 2 }
 0x19f   : > { %v1008_v3 = vpop.f32.mrf.mxu1  ;;  %1542 = vmatpush.msra.mxu0 %v2602_v45 }
 0x1a0   : > { %v1020_v5 = vadd.f32 %v1008_v3, %v947_v2  ;;  %2551 = vmatmul.msk.f32.gmra.mxu0 %vm493_vm2, %v3187_v1  ;;  %v1101_v57 = vrot.slane %v3187_v1, 1  ;;  %v1237_v6 = vrot.slane %v3187_v1, 3  ;;  %v1287_v8 = vrot.slane %v3187_v1, 4 }
 0x1a1   : > { %v1387_v9 = vrot.slane %v3187_v1, 6  ;;  %v1337_v60 = vrot.slane %v3187_v1, 5  ;;  %v1184_v3 = vrot.slane %v3125_v11, 2 }
 0x1a2   : > { %v1069_v10 = vadd.f32 %v1057_v29, %v1020_v5  ;;  %v3197_v26 = vsel %vm481_vm3, %v1099_v38, %v1101_v57  ;;  %v1238_v40 = vsel %vm669_vm7, %v1235_v17, %v1237_v6  ;;  %v1288_v14 = vsel %vm740_vm6, %v1285_v18, %v1287_v8  ;;  %v1060_v23 = vpop.f32.mrf.mxu2 }
 0x1a3   : > { %2545 = vmatmul.msk.f32.gmra.mxu3 %vm493_vm2, %v3197_v26  ;;  %2564 = vmatmul.msk.f32.gmra.mxu1 %vm493_vm2, %v1238_v40  ;;  %v3207_v19 = vsel %vm882_vm5, %v1385_v62, %v1387_v9  ;;  %v1334_v38 = vrot.slane %v3125_v11, 5  ;;  %v949_v18 = vadd.f32 %v941_v48, %v878_v35  ;;  %v1435_v29 = vrot.slane %v3144_v41, 7 }
 0x1a4   : > { %v1079_v12 = vadd.f32 %v3119_v7, %v1069_v10  ;;  %2571 = vmatmul.msk.f32.gmra.mxu2 %vm493_vm2, %v1288_v14  ;;  %v1338_v2 = vsel %vm811_vm8, %v1335_v43, %v1337_v60  ;;  %v1434_v5 = vrot.slane %v3125_v11, 7  ;;  %v1187_v11 = vrot.slane %v3187_v1, 2 }
 0x1a5   : > { %v1336_v49 = vsel %vm811_vm8, %v1334_v38, %v1335_v43  ;;  %v1437_v10 = vrot.slane %v3187_v1, 7 }
 0x1a6   : > { %v3209_v21 = vmax.f32 %v1079_v12, 0.0  ;;  %v1188_v14 = vsel %vm598_vm4, %v1185_v0, %v1187_v11 }
 0x1a7   : > { %v1011_v25 = vpop.f32.mrf.mxu1  ;;  %v1438_v16 = vsel %vm506_vm1, %v1435_v29, %v1437_v10 }
 0x1a8   : > { %v1021_v27 = vadd.f32 %v1011_v25, %v948_v22  ;;  %2552 = vmatmul.msk.f32.gmra.mxu0 %vm493_vm2, %v3209_v21  ;;  %v1103_v28 = vrot.slane %v3209_v21, 1  ;;  %v1239_v32 = vrot.slane %v3209_v21, 3  ;;  %v1289_v34 = vrot.slane %v3209_v21, 4 }
 0x1a9   : > { %v1389_v15 = vrot.slane %v3209_v21, 6  ;;  %v1339_v4 = vrot.slane %v3209_v21, 5  ;;  %v1189_v12 = vrot.slane %v3209_v21, 2  ;;  %v1439_v20 = vrot.slane %v3209_v21, 7 }
 0x1aa   : > { %v1070_v13 = vadd.f32 %v1060_v23, %v1021_v27  ;;  %v3219_v37 = vsel %vm481_vm3, %v1101_v57, %v1103_v28  ;;  %v1240_v39 = vsel %vm669_vm7, %v1237_v6, %v1239_v32  ;;  %v1290_v31 = vsel %vm740_vm6, %v1287_v8, %v1289_v34  ;;  %v1063_v50 = vpop.f32.mrf.mxu2 }
 0x1ab   : > { %2546 = vmatmul.msk.f32.gmra.mxu3 %vm493_vm2, %v3219_v37  ;;  %2565 = vmatmul.msk.f32.gmra.mxu1 %vm493_vm2, %v1240_v39  ;;  %v3239_v47 = vsel %vm882_vm5, %v1387_v9, %v1389_v15  ;;  %v1186_v57 = vsel %vm598_vm4, %v1184_v3, %v1185_v0  ;;  %v1436_v6 = vsel %vm506_vm1, %v1434_v5, %v1435_v29  ;;  %v2610_v9 = vld [vmem:[%s3769_s5 + $0xa8] sm:$0x1]  ;;  %v2620_v0 = vld [vmem:[%s3771_s7 + $0x60] sm:$0x3] }
 0x1ac   : > { %v1080_v44 = vadd.f32 %v3119_v7, %v1070_v13  ;;  %2572 = vmatmul.msk.f32.gmra.mxu2 %vm493_vm2, %v1290_v31  ;;  %v1340_v40 = vsel %vm811_vm8, %v1337_v60, %v1339_v4  ;;  %v1190_v23 = vsel %vm598_vm4, %v1187_v11, %v1189_v12  ;;  %v1440_v25 = vsel %vm506_vm1, %v1437_v10, %v1439_v20  ;;  %v2617_v5 = vld [vmem:[%s3771_s7 + $0x48] sm:$0xff]  ;;  %v2616_v10 = vld [vmem:[%s3771_s7 + $0x40] sm:$0xff] }
 0x1ad   : > { %2624 = vmatpush.msk.msrb.mxu1 %vm882_vm5, %v2620_v0 }
 0x1ae   : > { %v3243_v17 = vmax.f32 %v1080_v44, 0.0 }
 0x1af   : > { %v1014_v36 = vpop.f32.mrf.mxu1  ;;  %1646 = vmatpush.msrb.mxu1 %v2616_v10  ;;  %v2268_v10 = vld [vmem:[%s3773_s9 + $0x68] sm:$0xff] }
 0x1b0   : > { %v1022_v51 = vadd.f32 %v1014_v36, %v949_v18  ;;  %2577 = vmatmul.msk.f32.vlgmr.msrb.gmra.mxu0 %vm493_vm2, %v1336_v49  ;;  %v1105_v52 = vrot.slane %v3243_v17, 1  ;;  %v1241_v53 = vrot.slane %v3243_v17, 3  ;;  %v1291_v54 = vrot.slane %v3243_v17, 4 }
 0x1b1   : > { %v1391_v55 = vrot.slane %v3243_v17, 6  ;;  %v1441_v27 = vrot.slane %v3243_v17, 7 }
 0x1b2   : > { %v1071_v56 = vadd.f32 %v1063_v50, %v1022_v51  ;;  %v1106_v58 = vsel %vm481_vm3, %v1103_v28, %v1105_v52  ;;  %v1242_v30 = vsel %vm669_vm7, %v1239_v32, %v1241_v53  ;;  %v1292_v59 = vsel %vm740_vm6, %v1289_v34, %v1291_v54 }
 0x1b3   : > { %2547 = vmatmul.msk.f32.gmra.mxu3 %vm493_vm2, %v1106_v58  ;;  %2566 = vmatmul.msk.f32.gmra.mxu1 %vm493_vm2, %v1242_v30  ;;  %v1392_v62 = vsel %vm882_vm5, %v1389_v15, %v1391_v55  ;;  %v1442_v32 = vsel %vm506_vm1, %v1439_v20, %v1441_v27  ;;  %v1597_v20 = vld [vmem:[%s3771_s7] sm:$0xff]  ;;  %v2619_v27 = vld [vmem:[%s3771_s7 + $0x58] sm:$0xff] }
 0x1b4   : > { %v1081_v61 = vadd.f32 %v3119_v7, %v1071_v56  ;;  %2573 = vmatmul.msk.f32.gmra.mxu2 %vm493_vm2, %v1292_v59  ;;  %v1191_v7 = vrot.slane %v3243_v17, 2  ;;  %v2621_v59 = vld [vmem:[%s3771_s7 + $0x68] sm:$0x3] }
 0x1b5   : > { %2626 = vmatpush.msk.msrb.mxu2 %vm882_vm5, %v2621_v59  ;;  %v2662_v59 = vld [vmem:[%s3771_s7 + $0xf0] sm:$0x3] }
 0x1b6   : > { %v1087_v63 = vmax.f32 %v1081_v61, 0.0  ;;  %v1192_v28 = vsel %vm598_vm4, %v1189_v12, %v1191_v7  ;;  %v1601_v12 = vld [vmem:[%s3771_s7 + $0x20] sm:$0x3] }
 0x1b7   : > { %1666 = vmatpush.msrb.mxu2 %v2617_v5  ;;  %v2674_v5 = vld [vmem:[%s3771_s7 + $0x110] sm:$0xff] }
 0x1b8   : > { %v1557_v46 = vrot.slane %v1087_v63, 2  ;;  %2578 = vmatmul.msk.f32.gmra.mxu0 %vm493_vm2, %v1338_v2 }
 0x1ba   : > { %v1558_v8 = vsel %vm598_vm4, %v1191_v7, %v1557_v46  ;;  %v2622_v7 = vld [vmem:[%s3771_s7 + $0x70] sm:$0x3] }
 0x1bb   : > { %2556 = vmatmul.msk.f32.vlgmr.msrb.gmra.mxu3 %vm493_vm2, %v1186_v57  ;;  %2591 = vmatmul.msk.f32.vlgmr.msra.gmra.mxu1 %vm493_vm2, %v1436_v6  ;;  %v2644_v57 = vld [vmem:[%s3771_s7 + $0xa0] sm:$0x3] }
 0x1bc   : > { %2598 = vmatmul.msk.f32.vlgmr.msra.gmra.mxu2 %vm493_vm2, %v3144_v41  ;;  %2611 = vmatpush.msk.msrb.mxu3 %vm506_vm1, %v2610_v9  ;;  %v1341_v41 = vrot.slane %v3243_v17, 5 }
 0x1bd   : > { %2628 = vmatpush.msk.msrb.mxu0 %vm882_vm5, %v2622_v7  ;;  %2632 = vmatpush.msk.msra.mxu2 %vm882_vm5, %v1601_v12  ;;  %v2689_v7 = vld [vmem:[%s3771_s7 + $0x148] sm:$0xff] }
 0x1be   : > { %v1342_v22 = vsel %vm811_vm8, %v1339_v4, %v1341_v41  ;;  %v2640_v41 = vld [vmem:[%s3771_s7 + $0x80] sm:$0xff]  ;;  %v2264_v12 = vld [vmem:[%s3773_s9 + $0x48] sm:$0xff] }
 0x1bf   : > { %1740 = vmatpush.msra.mxu2 %v1597_v20  ;;  %v2285_v20 = vld [vmem:[%s3773_s9 + $0xf0] sm:$0xff] }
 0x1c0   : > { %2579 = vmatmul.msk.f32.gmra.mxu0 %vm493_vm2, %v1340_v40 }
 0x1c3   : > { %2557 = vmatmul.msk.f32.gmra.mxu3 %vm493_vm2, %v1188_v14  ;;  %2592 = vmatmul.msk.f32.gmra.mxu1 %vm493_vm2, %v1438_v16  ;;  %v2618_v16 = vld [vmem:[%s3771_s7 + $0x50] sm:$0xff] }
 0x1c4   : > { %2599 = vmatmul.msk.f32.gmra.mxu2 %vm493_vm2, %v3187_v1  ;;  %v2609_v1 = vld [vmem:[%s3769_s5 + $0xa0] sm:$0xff]  ;;  %1686 = vmatpush.msrb.mxu0 %v2618_v16  ;;  %v2265_v16 = vld [vmem:[%s3773_s9 + $0x50] sm:$0xff] }
 0x1c5   : > { %1579 = vmatpush.msrb.mxu3 %v2609_v1 }
 0x1c8   : > { %2580 = vmatmul.msk.f32.gmra.mxu0 %vm493_vm2, %v1342_v22  ;;  %v2623_v22 = vld [vmem:[%s3771_s7 + $0x78] sm:$0x3] }
 0x1c9   : > { %2630 = vmatpush.msk.msra.mxu1 %vm882_vm5, %v2623_v22  ;;  %v2263_v22 = vld [vmem:[%s3773_s9 + $0x40] sm:$0xff] }
 0x1cb   : > { %2558 = vmatmul.msk.f32.gmra.mxu3 %vm493_vm2, %v1190_v23  ;;  %2593 = vmatmul.msk.f32.gmra.mxu1 %vm493_vm2, %v1440_v25  ;;  %v2660_v25 = vld [vmem:[%s3771_s7 + $0xe0] sm:$0x3] }
 0x1cc   : > { %2600 = vmatmul.msk.f32.gmra.mxu2 %vm493_vm2, %v3209_v21  ;;  %1706 = vmatpush.msra.mxu1 %v2619_v27  ;;  %v2261_v27 = vld [vmem:[%s3773_s9 + $0x30] sm:$0xff] }
 0x1d0   : > { %2605 = vmatmul.msk.f32.vlgmr.msra.gmra.mxu0 %vm493_vm2, %v3197_v26  ;;  %v1520_v26 = vrot.slane %v1087_v63, 1 }
 0x1d2   : > { %v1521_v21 = vsel %vm481_vm3, %v1105_v52, %v1520_v26 }
 0x1d3   : > { %2559 = vmatmul.msk.f32.gmra.mxu3 %vm493_vm2, %v1192_v28  ;;  %2594 = vmatmul.msk.f32.gmra.mxu1 %vm493_vm2, %v1442_v32  ;;  %v2656_v32 = vld [vmem:[%s3771_s7 + $0xc0] sm:$0xff] }
 0x1d4   : > { %2601 = vmatmul.msk.f32.gmra.mxu2 %vm493_vm2, %v3243_v17 }
 0x1d8   : > { %2606 = vmatmul.msk.f32.gmra.mxu0 %vm493_vm2, %v3219_v37 }
 0x1db   : > { %2584 = vmatmul.msk.f32.vlgmr.msra.gmra.mxu3 %vm493_vm2, %v3185_v42 }
 0x1dc   : > { %2648 = vmatpush.msk.msra.mxu3 %vm882_vm5, %v2644_v57  ;;  %v2695_v57 = vld [vmem:[%s3771_s7 + $0x178] sm:$0x3] }
 0x1de   : > { %1844 = vmatpush.msra.mxu3 %v2640_v41  ;;  %v2286_v41 = vld [vmem:[%s3773_s9 + $0xf8] sm:$0xff] }
 0x1e0   : > { %2607 = vmatmul.msk.f32.gmra.mxu0 %vm493_vm2, %v1106_v58 }
 0x1e3   : > { %2585 = vmatmul.msk.f32.gmra.mxu3 %vm493_vm2, %v3207_v19 }
 0x1e8   : > { %2608 = vmatmul.msk.f32.gmra.mxu0 %vm493_vm2, %v1521_v21 }
 0x1eb   : > { %2586 = vmatmul.msk.f32.gmra.mxu3 %vm493_vm2, %v3239_v47 }
 0x1f3   : > { %2587 = vmatmul.msk.f32.gmra.mxu3 %vm493_vm2, %v1392_v62 }
 0x1fb   : > { %2612 = vmatmul.msk.f32.vlgmr.msrb.gmra.mxu3 %vm493_vm2, %v1188_v14 }
 0x1fc   : > { %2664 = vmatpush.msk.msrb.mxu3 %vm882_vm5, %v2660_v25  ;;  %v2262_v25 = vld [vmem:[%s3773_s9 + $0x38] sm:$0xff] }
 0x1fe   : > { %1952 = vmatpush.msrb.mxu3 %v2656_v32  ;;  %v2302_v32 = vld [vmem:[%s3773_s9 + $0x178] sm:$0xff] }
 0x203   : > { %2613 = vmatmul.msk.f32.gmra.mxu3 %vm493_vm2, %v1190_v23  ;;  %v1602_v23 = vld [vmem:[%s3771_s7 + $0x28] sm:$0x3] }
 0x204   : > { %2634 = vmatpush.msk.msra.mxu0 %vm882_vm5, %v1602_v23  ;;  %v2284_v23 = vld [vmem:[%s3773_s9 + $0xe8] sm:$0xff] }
 0x20b   : > { %2614 = vmatmul.msk.f32.gmra.mxu3 %vm493_vm2, %v1192_v28  ;;  %v1598_v28 = vld [vmem:[%s3771_s7 + $0x8] sm:$0xff] }
 0x20c   : > { %1760 = vmatpush.msra.mxu0 %v1598_v28  ;;  %v2282_v28 = vld [vmem:[%s3773_s9 + $0xd8] sm:$0xff] }
 0x20d   : > { %v1172_v42 = vpop.f32.mrf.mxu0 }
 0x213   : > { %2615 = vmatmul.msk.f32.gmra.mxu3 %vm493_vm2, %v1558_v8 }
 0x215   : > { %v1175_v19 = vpop.f32.mrf.mxu0 }
 0x216   : > { %v2717_v19 = vld [vmem:[%s3770_s6] ss:$0 sm:$0xff] }
 0x218   : > { %v1271_v34 = vpop.f32.mrf.mxu1 }
 0x21d   : > { %v1177_v35 = vpop.f32.mrf.mxu0 }
 0x21e   : > { %v1135_v15 = vpop.f32.mrf.mxu3 }
 0x21f   : > { %v1173_v13 = vadd.f32 %v1172_v42, %v1135_v15  ;;  %v1321_v37 = vpop.f32.mrf.mxu2 }
 0x220   : > { %v1274_v39 = vpop.f32.mrf.mxu1 }
 0x225   : > { %v1179_v31 = vpop.f32.mrf.mxu0 }
 0x226   : > { %v1138_v43 = vpop.f32.mrf.mxu3 }
 0x227   : > { %v1324_v33 = vpop.f32.mrf.mxu2  ;;  %v1604_v43 = vld [vmem:[%s3771_s7 + $0x38] sm:$0x3] }
 0x228   : > { %v1276_v44 = vpop.f32.mrf.mxu1  ;;  %v1603_v33 = vld [vmem:[%s3771_s7 + $0x30] sm:$0x3] }
 0x229   : > { %v2645_v44 = vld [vmem:[%s3771_s7 + $0xa8] sm:$0x3] }
 0x22d   : > { %v1371_v24 = vpop.f32.mrf.mxu0 }
 0x22e   : > { %v1140_v45 = vpop.f32.mrf.mxu3 }
 0x22f   : > { %v1326_v47 = vpop.f32.mrf.mxu2  ;;  %v1600_v45 = vld [vmem:[%s3771_s7 + $0x18] sm:$0xff] }
 0x230   : > { %v1278_v48 = vpop.f32.mrf.mxu1  ;;  %v1599_v47 = vld [vmem:[%s3771_s7 + $0x10] sm:$0xff] }
 0x231   : > { %v2641_v48 = vld [vmem:[%s3771_s7 + $0x88] sm:$0xff] }
 0x235   : > { %v1374_v38 = vpop.f32.mrf.mxu0 }
 0x236   : > { %v1142_v17 = vpop.f32.mrf.mxu3  ;;  %v2672_v38 = vld [vmem:[%s3771_s7 + $0x100] sm:$0xff] }
 0x237   : > { %v1328_v18 = vpop.f32.mrf.mxu2 }
 0x238   : > { %v1471_v36 = vpop.f32.mrf.mxu1 }
 0x23d   : > { %v1376_v49 = vpop.f32.mrf.mxu0 }
 0x23e   : > { %v1221_v50 = vpop.f32.mrf.mxu3  ;;  %v2646_v49 = vld [vmem:[%s3771_s7 + $0xb0] sm:$0x3] }
 0x23f   : > { %v1230_v51 = vadd.f32 %v1221_v50, %v1173_v13  ;;  %v1506_v52 = vpop.f32.mrf.mxu2  ;;  %v2661_v50 = vld [vmem:[%s3771_s7 + $0xe8] sm:$0x3] }
 0x240   : > { %v1474_v53 = vpop.f32.mrf.mxu1 }
 0x241   : > { %v1280_v54 = vadd.f32 %v1271_v34, %v1230_v51  ;;  %v2692_v51 = vld [vmem:[%s3771_s7 + $0x160] sm:$0x3]  ;;  %v2642_v53 = vld [vmem:[%s3771_s7 + $0x90] sm:$0xff] }
 0x243   : > { %v1330_v55 = vadd.f32 %v1321_v37, %v1280_v54  ;;  %v2657_v54 = vld [vmem:[%s3771_s7 + $0xc8] sm:$0xff] }
 0x245   : > { %v1378_v56 = vpop.f32.mrf.mxu0  ;;  %v1380_v58 = vadd.f32 %v1371_v24, %v1330_v55  ;;  %v2676_v24 = vld [vmem:[%s3771_s7 + $0x120] sm:$0x3] }
 0x246   : > { %v1224_v30 = vpop.f32.mrf.mxu3  ;;  %v2688_v55 = vld [vmem:[%s3771_s7 + $0x140] sm:$0xff] }
 0x247   : > { %v1509_v60 = vpop.f32.mrf.mxu2  ;;  %v2663_v30 = vld [vmem:[%s3771_s7 + $0xf8] sm:$0x3] }
 0x248   : > { %v1476_v61 = vpop.f32.mrf.mxu1  ;;  %v2677_v60 = vld [vmem:[%s3771_s7 + $0x128] sm:$0x3] }
 0x249   : > { %v2659_v61 = vld [vmem:[%s3771_s7 + $0xd8] sm:$0xff] }
 0x24d   : > { %v1544_v62 = vpop.f32.mrf.mxu0 }
 0x24e   : > { %v1226_v63 = vpop.f32.mrf.mxu3 }
 0x24f   : > { %v1511_v29 = vpop.f32.mrf.mxu2  ;;  %v2673_v63 = vld [vmem:[%s3771_s7 + $0x108] sm:$0xff] }
 0x250   : > { %v1478_v2 = vpop.f32.mrf.mxu1  ;;  %v2679_v29 = vld [vmem:[%s3771_s7 + $0x138] sm:$0x3] }
 0x251   : > { %v2678_v2 = vld [vmem:[%s3771_s7 + $0x130] sm:$0x3] }
 0x255   : > { %v1547_v46 = vpop.f32.mrf.mxu0 }
 0x256   : > { %v1228_v3 = vpop.f32.mrf.mxu3  ;;  %v2693_v46 = vld [vmem:[%s3771_s7 + $0x168] sm:$0x3] }
 0x257   : > { %v1513_v6 = vpop.f32.mrf.mxu2  ;;  %v2675_v3 = vld [vmem:[%s3771_s7 + $0x118] sm:$0xff] }
 0x258   : > { %v2694_v6 = vld [vmem:[%s3771_s7 + $0x170] sm:$0x3] }
 0x25d   : > { %v1549_v8 = vpop.f32.mrf.mxu0 }
 0x25e   : > { %v1421_v4 = vpop.f32.mrf.mxu3  ;;  %v2691_v8 = vld [vmem:[%s3771_s7 + $0x158] sm:$0xff] }
 0x25f   : > { %v1430_v9 = vadd.f32 %v1421_v4, %v1380_v58  ;;  %v2690_v4 = vld [vmem:[%s3771_s7 + $0x150] sm:$0xff] }
 0x261   : > { %v1480_v11 = vadd.f32 %v1471_v36, %v1430_v9  ;;  %v2647_v36 = vld [vmem:[%s3771_s7 + $0xb8] sm:$0x3] }
 0x262   : > { %v2270_v9 = vld [vmem:[%s3773_s9 + $0x78] sm:$0xff] }
 0x263   : > { %v1515_v21 = vadd.f32 %v1506_v52, %v1480_v11  ;;  %v2643_v52 = vld [vmem:[%s3771_s7 + $0x98] sm:$0xff]  ;;  %v2269_v11 = vld [vmem:[%s3773_s9 + $0x70] sm:$0xff] }
 0x265   : > { %v1551_v40 = vpop.f32.mrf.mxu0  ;;  %v1553_v42 = vadd.f32 %v1544_v62, %v1515_v21  ;;  %v2658_v62 = vld [vmem:[%s3771_s7 + $0xd0] sm:$0xff] }
 0x266   : > { %v1424_v14 = vpop.f32.mrf.mxu3  ;;  %v2267_v40 = vld [vmem:[%s3773_s9 + $0x60] sm:$0xff]  ;;  %v2281_v21 = vld [vmem:[%s3773_s9 + $0xd0] sm:$0xff] }
 0x267   : > { %v2266_v14 = vld [vmem:[%s3773_s9 + $0x58] sm:$0xff] }
 0x26e   : > { %v1426_v1 = vpop.f32.mrf.mxu3 }
 0x26f   : > { %v2283_v1 = vld [vmem:[%s3773_s9 + $0xe0] sm:$0xff] }
 0x276   : > { %v1428_v26 = vpop.f32.mrf.mxu3 }
 0x277   : > { %v2260_v26 = vld [vmem:[%s3773_s9 + $0x28] sm:$0xff] }
 0x27e   : > { %v1581_v34 = vpop.f32.mrf.mxu3 }
 0x27f   : > { %v1590_v35 = vadd.f32 %v1581_v34, %v1553_v42  ;;  %v2301_v42 = vld [vmem:[%s3773_s9 + $0x170] sm:$0xff]  ;;  %v2280_v34 = vld [vmem:[%s3773_s9 + $0xc8] sm:$0xff] }
 0x281   : > { %v1595_v15 = vadd.f32 %v2717_v19, %v1590_v35  ;;  %v2259_v19 = vld [vmem:[%s3773_s9 + $0x20] sm:$0xff]  ;;  %v2300_v35 = vld [vmem:[%s3773_s9 + $0x168] sm:$0xff] }
 0x283   : > { %v3391_v13 = vmax.f32 %v1595_v15, 0.0 }
 0x285   : > { %v1615_v37 = vrot.slane %v3391_v13, 1  ;;  %v3395_v39 = vrot.slane %v3391_v13, 2  ;;  %v1922_v18 = vrot.slane %v3391_v13, 3  ;;  %v2030_v58 = vrot.slane %v3391_v13, 4 }
 0x286   : > { %v1584_v31 = vpop.f32.mrf.mxu3  ;;  %v2138_v0 = vrot.slane %v3391_v13, 5 }
 0x287   : > { %2625 = vmatmul.msk.f32.vlgmr.msrb.gmra.mxu1 %vm1616_vm9, %v1615_v37  ;;  %2627 = vmatmul.msk.f32.vlgmr.msrb.gmra.mxu2 %vm1616_vm9, %v1615_v37  ;;  %v2299_v31 = vld [vmem:[%s3773_s9 + $0x160] sm:$0xff] }
 0x288   : > { %2629 = vmatmul.msk.f32.vlgmr.msrb.gmra.mxu0 %vm1616_vm9, %v1615_v37  ;;  %2649 = vmatmul.msk.f32.vlgmr.msra.gmra.mxu3 %vm1616_vm9, %v3395_v39 }
 0x289   : > { %2638 = vmatpush.msk.msrb.mxu2 %vm882_vm5, %v1604_v43  ;;  %2636 = vmatpush.msk.msrb.mxu1 %vm882_vm5, %v1603_v33  ;;  %v2318_v43 = vld [vmem:[%s3773_s9 + $0x1f8] sm:$0xff]  ;;  %v2257_v33 = vld [vmem:[%s3773_s9 + $0x10] sm:$0xff] }
 0x28a   : > { %2650 = vmatpush.msk.msrb.mxu0 %vm882_vm5, %v2645_v44  ;;  %2680 = vmatpush.msk.msra.mxu3 %vm882_vm5, %v2676_v24  ;;  %v2278_v44 = vld [vmem:[%s3773_s9 + $0xb8] sm:$0xff] }
 0x28b   : > { %1800 = vmatpush.msrb.mxu2 %v1600_v45  ;;  %1780 = vmatpush.msrb.mxu1 %v1599_v47  ;;  %v2298_v24 = vld [vmem:[%s3773_s9 + $0x158] sm:$0xff]  ;;  %v2317_v45 = vld [vmem:[%s3773_s9 + $0x1f0] sm:$0xff]  ;;  %v2256_v47 = vld [vmem:[%s3773_s9 + $0x8] sm:$0xff] }
 0x28c   : > { %1864 = vmatpush.msrb.mxu0 %v2641_v48  ;;  %2060 = vmatpush.msra.mxu3 %v2672_v38  ;;  %v2277_v48 = vld [vmem:[%s3773_s9 + $0xb0] sm:$0xff] }
 0x28d   : > { %v2297_v38 = vld [vmem:[%s3773_s9 + $0x150] sm:$0xff] }
 0x28e   : > { %v1586_v17 = vpop.f32.mrf.mxu3 }
 0x28f   : > { %2631 = vmatmul.msk.f32.vlgmr.msra.gmra.mxu1 %vm1616_vm9, %v1615_v37  ;;  %2633 = vmatmul.msk.f32.vlgmr.msra.gmra.mxu2 %vm1616_vm9, %v3391_v13  ;;  %v2279_v37 = vld [vmem:[%s3773_s9 + $0xc0] sm:$0xff]  ;;  %v2316_v17 = vld [vmem:[%s3773_s9 + $0x1e8] sm:$0xff] }
 0x290   : > { %2635 = vmatmul.msk.f32.vlgmr.msra.gmra.mxu0 %vm1616_vm9, %v3391_v13  ;;  %2665 = vmatmul.msk.f32.vlgmr.msrb.gmra.mxu3 %vm1616_vm9, %v1922_v18 }
 0x291   : > { %2654 = vmatpush.msk.msra.mxu2 %vm882_vm5, %v2647_v36  ;;  %2652 = vmatpush.msk.msra.mxu1 %vm882_vm5, %v2646_v49  ;;  %v2276_v36 = vld [vmem:[%s3773_s9 + $0xa8] sm:$0xff] }
 0x292   : > { %2666 = vmatpush.msk.msra.mxu0 %vm882_vm5, %v2661_v50  ;;  %2696 = vmatpush.msk.msrb.mxu3 %vm882_vm5, %v2692_v51  ;;  %v2296_v50 = vld [vmem:[%s3773_s9 + $0x148] sm:$0xff]  ;;  %v2315_v51 = vld [vmem:[%s3773_s9 + $0x1e0] sm:$0xff] }
 0x293   : > { %1904 = vmatpush.msra.mxu2 %v2643_v52  ;;  %1884 = vmatpush.msra.mxu1 %v2642_v53  ;;  %v2275_v53 = vld [vmem:[%s3773_s9 + $0xa0] sm:$0xff] }
 0x294   : > { %1972 = vmatpush.msra.mxu0 %v2657_v54  ;;  %2168 = vmatpush.msrb.mxu3 %v2688_v55  ;;  %v2295_v54 = vld [vmem:[%s3773_s9 + $0x140] sm:$0xff]  ;;  %v2314_v55 = vld [vmem:[%s3773_s9 + $0x1d8] sm:$0xff] }
 0x296   : > { %v1588_v56 = vpop.f32.mrf.mxu3 }
 0x297   : > { %2637 = vmatmul.msk.f32.vlgmr.msrb.gmra.mxu1 %vm1616_vm9, %v3391_v13  ;;  %2639 = vmatmul.msk.f32.vlgmr.msrb.gmra.mxu2 %vm1616_vm9, %v3391_v13  ;;  %v2258_v13 = vld [vmem:[%s3773_s9 + $0x18] sm:$0xff] }
 0x298   : > { %2651 = vmatmul.msk.f32.vlgmr.msrb.gmra.mxu0 %vm1616_vm9, %v3395_v39  ;;  %2681 = vmatmul.msk.f32.vlgmr.msra.gmra.mxu3 %vm1616_vm9, %v2030_v58 }
 0x299   : > { %2670 = vmatpush.msk.msrb.mxu2 %vm882_vm5, %v2663_v30  ;;  %2668 = vmatpush.msk.msrb.mxu1 %vm882_vm5, %v2662_v59  ;;  %v2274_v30 = vld [vmem:[%s3773_s9 + $0x98] sm:$0xff] }
 0x29a   : > { %2682 = vmatpush.msk.msrb.mxu0 %vm882_vm5, %v2677_v60  ;;  %2320 = vmatpush.msra.mxu3 %v2270_v9  ;;  %v2294_v59 = vld [vmem:[%s3773_s9 + $0x138] sm:$0xff]  ;;  %v2313_v60 = vld [vmem:[%s3773_s9 + $0x1d0] sm:$0xff] }
 0x29b   : > { %2012 = vmatpush.msrb.mxu2 %v2659_v61  ;;  %1992 = vmatpush.msrb.mxu1 %v2658_v62  ;;  %v2273_v61 = vld [vmem:[%s3773_s9 + $0x90] sm:$0xff] }
 0x29c   : > { %2080 = vmatpush.msrb.mxu0 %v2673_v63  ;;  %2321 = vmatpush.msra.mxu3 %v2269_v11  ;;  %v2293_v62 = vld [vmem:[%s3773_s9 + $0x130] sm:$0xff]  ;;  %v2312_v63 = vld [vmem:[%s3773_s9 + $0x1c8] sm:$0xff] }
 0x29d   : > { %v2309_v9 = vld [vmem:[%s3773_s9 + $0x1b0] sm:$0xff] }
 0x29e   : > { %2322 = vmatpush.msra.mxu3 %v2268_v10  ;;  %v2289_v10 = vld [vmem:[%s3773_s9 + $0x110] sm:$0xff] }
 0x29f   : > { %2653 = vmatmul.msk.f32.vlgmr.msra.gmra.mxu1 %vm1616_vm9, %v3395_v39  ;;  %2655 = vmatmul.msk.f32.vlgmr.msra.gmra.mxu2 %vm1616_vm9, %v3395_v39 }
 0x2a0   : > { %2667 = vmatmul.msk.f32.vlgmr.msra.gmra.mxu0 %vm1616_vm9, %v1922_v18  ;;  %2697 = vmatmul.msk.f32.vlgmr.msrb.gmra.mxu3 %vm1616_vm9, %v2138_v0 }
 0x2a1   : > { %2686 = vmatpush.msk.msra.mxu2 %vm882_vm5, %v2679_v29  ;;  %2684 = vmatpush.msk.msra.mxu1 %vm882_vm5, %v2678_v2  ;;  %v2272_v29 = vld [vmem:[%s3773_s9 + $0x88] sm:$0xff] }
 0x2a2   : > { %2698 = vmatpush.msk.msra.mxu0 %vm882_vm5, %v2693_v46  ;;  %2323 = vmatpush.msra.mxu3 %v2267_v40  ;;  %v2292_v2 = vld [vmem:[%s3773_s9 + $0x128] sm:$0xff]  ;;  %v2311_v46 = vld [vmem:[%s3773_s9 + $0x1c0] sm:$0xff] }
 0x2a3   : > { %2120 = vmatpush.msra.mxu2 %v2675_v3  ;;  %2100 = vmatpush.msra.mxu1 %v2674_v5  ;;  %v2271_v5 = vld [vmem:[%s3773_s9 + $0x80] sm:$0xff]  ;;  %v2308_v40 = vld [vmem:[%s3773_s9 + $0x1a8] sm:$0xff] }
 0x2a4   : > { %2188 = vmatpush.msra.mxu0 %v2689_v7  ;;  %2324 = vmatpush.msra.mxu3 %v2266_v14  ;;  %v2291_v7 = vld [vmem:[%s3773_s9 + $0x120] sm:$0xff]  ;;  %v2288_v14 = vld [vmem:[%s3773_s9 + $0x108] sm:$0xff] }
 0x2a6   : > { %2325 = vmatpush.msra.mxu3 %v2265_v16  ;;  %v2307_v16 = vld [vmem:[%s3773_s9 + $0x1a0] sm:$0xff] }
 0x2a7   : > { %2669 = vmatmul.msk.f32.vlgmr.msrb.gmra.mxu1 %vm1616_vm9, %v1922_v18  ;;  %2671 = vmatmul.msk.f32.vlgmr.msrb.gmra.mxu2 %vm1616_vm9, %v1922_v18  ;;  %v2255_v18 = vld [vmem:[%s3773_s9] sm:$0xff] }
 0x2a8   : > { %2683 = vmatmul.msk.f32.vlgmr.msrb.gmra.mxu0 %vm1616_vm9, %v2030_v58  ;;  %2702 = vmatpush.msk.msrb.mxu2 %vm882_vm5, %v2695_v57  ;;  %v2310_v57 = vld [vmem:[%s3773_s9 + $0x1b8] sm:$0xff] }
 0x2a9   : > { %2700 = vmatpush.msk.msrb.mxu1 %vm882_vm5, %v2694_v6  ;;  %2340 = vmatpush.msrb.mxu0 %v2286_v41 }
 0x2aa   : > { %2228 = vmatpush.msrb.mxu2 %v2691_v8  ;;  %2326 = vmatpush.msra.mxu3 %v2264_v12 }
 0x2ab   : > { %2208 = vmatpush.msrb.mxu1 %v2690_v4  ;;  %2341 = vmatpush.msrb.mxu0 %v2285_v20  ;;  %v2290_v4 = vld [vmem:[%s3773_s9 + $0x118] sm:$0xff] }
 0x2ac   : > { %2327 = vmatpush.msra.mxu3 %v2263_v22 }
 0x2ad   : > { %2342 = vmatpush.msrb.mxu0 %v2284_v23  ;;  %v2287_v23 = vld [vmem:[%s3773_s9 + $0x100] sm:$0xff] }
 0x2ae   : > { %2328 = vmatpush.msra.mxu3 %v2262_v25  ;;  %v2306_v25 = vld [vmem:[%s3773_s9 + $0x198] sm:$0xff] }
 0x2af   : > { %2685 = vmatmul.msk.f32.vlgmr.msra.gmra.mxu1 %vm1616_vm9, %v2030_v58  ;;  %2687 = vmatmul.msk.f32.vlgmr.msra.gmra.mxu2 %vm1616_vm9, %v2030_v58 }
 0x2b0   : > { %2699 = vmatmul.msk.f32.vlgmr.msra.gmra.mxu0 %vm1616_vm9, %v2138_v0  ;;  %2329 = vmatpush.msra.mxu3 %v2261_v27  ;;  %v2305_v27 = vld [vmem:[%s3773_s9 + $0x190] sm:$0xff] }
 0x2b1   : > { %2343 = vmatpush.msrb.mxu0 %v2283_v1  ;;  %2360 = vmatpush.msra.mxu1 %v2302_v32  ;;  %v2304_v32 = vld [vmem:[%s3773_s9 + $0x188] sm:$0xff] }
 0x2b2   : > { %2330 = vmatpush.msra.mxu3 %v2260_v26  ;;  %2380 = vmatpush.msra.mxu2 %v2318_v43 }
 0x2b3   : > { %2344 = vmatpush.msrb.mxu0 %v2282_v28  ;;  %2361 = vmatpush.msra.mxu1 %v2301_v42  ;;  %v2237_v28 = vld [vmem:[%s3772_s8] sm:$0xf] }
 0x2b4   : > { %2331 = vmatpush.msra.mxu3 %v2259_v19  ;;  %2381 = vmatpush.msra.mxu2 %v2317_v45 }
 0x2b5   : > { %2345 = vmatpush.msrb.mxu0 %v2281_v21  ;;  %2362 = vmatpush.msra.mxu1 %v2300_v35  ;;  %v2303_v21 = vld [vmem:[%s3773_s9 + $0x180] sm:$0xff] }
 0x2b6   : > { %2332 = vmatpush.msra.mxu3 %v2258_v13  ;;  %2382 = vmatpush.msra.mxu2 %v2316_v17 }
 0x2b7   : > { %2701 = vmatmul.msk.f32.vlgmr.msrb.gmra.mxu1 %vm1616_vm9, %v2138_v0  ;;  %2703 = vmatmul.msk.f32.vlgmr.msrb.gmra.mxu2 %vm1616_vm9, %v2138_v0 }
 0x2b8   : > { %2346 = vmatpush.msrb.mxu0 %v2280_v34  ;;  %2363 = vmatpush.msra.mxu1 %v2299_v31  ;;  %v2239_v34 = vperm.slane %v2237_v28, 0 }
 0x2b9   : > { %2333 = vmatpush.msra.mxu3 %v2257_v33  ;;  %2383 = vmatpush.msra.mxu2 %v2315_v51 }
 0x2ba   : > { %2347 = vmatpush.msrb.mxu0 %v2279_v37  ;;  %2364 = vmatpush.msra.mxu1 %v2298_v24 }
 0x2bb   : > { %2334 = vmatpush.msra.mxu3 %v2256_v47  ;;  %2384 = vmatpush.msra.mxu2 %v2314_v55 }
 0x2bc   : > { %2348 = vmatpush.msrb.mxu0 %v2278_v44  ;;  %2365 = vmatpush.msra.mxu1 %v2297_v38  ;;  %v2240_v38 = vperm.slane %v2237_v28, 1 }
 0x2bd   : > { %2335 = vmatpush.msra.mxu3 %v2255_v18  ;;  %2385 = vmatpush.msra.mxu2 %v2313_v60 }
 0x2be   : > { %2349 = vmatpush.msrb.mxu0 %v2277_v48  ;;  %2366 = vmatpush.msra.mxu1 %v2296_v50 }
 0x2bf   : > { %2386 = vmatpush.msra.mxu2 %v2312_v63 }
 0x2c0   : > { %2350 = vmatpush.msrb.mxu0 %v2276_v36  ;;  %2367 = vmatpush.msra.mxu1 %v2295_v54 }
 0x2c1   : > { %2387 = vmatpush.msra.mxu2 %v2311_v46 }
 0x2c2   : > { %2351 = vmatpush.msrb.mxu0 %v2275_v53  ;;  %2368 = vmatpush.msra.mxu1 %v2294_v59 }
 0x2c3   : > { %2388 = vmatpush.msra.mxu2 %v2310_v57 }
 0x2c4   : > { %2352 = vmatpush.msrb.mxu0 %v2274_v30  ;;  %2369 = vmatpush.msra.mxu1 %v2293_v62 }
 0x2c5   : > { %2389 = vmatpush.msra.mxu2 %v2309_v9 }
 0x2c6   : > { %2353 = vmatpush.msrb.mxu0 %v2273_v61  ;;  %2370 = vmatpush.msra.mxu1 %v2292_v2 }
 0x2c7   : > { %2390 = vmatpush.msra.mxu2 %v2308_v40 }
 0x2c8   : > { %2354 = vmatpush.msrb.mxu0 %v2272_v29  ;;  %2371 = vmatpush.msra.mxu1 %v2291_v7 }
 0x2c9   : > { %2391 = vmatpush.msra.mxu2 %v2307_v16 }
 0x2ca   : > { %2355 = vmatpush.msrb.mxu0 %v2271_v5  ;;  %2372 = vmatpush.msra.mxu1 %v2290_v4 }
 0x2cb   : > { %2392 = vmatpush.msra.mxu2 %v2306_v25 }
 0x2cc   : > { %2373 = vmatpush.msra.mxu1 %v2289_v10 }
 0x2cd   : > { %2393 = vmatpush.msra.mxu2 %v2305_v27 }
 0x2ce   : > { %2374 = vmatpush.msra.mxu1 %v2288_v14 }
 0x2cf   : > { %2394 = vmatpush.msra.mxu2 %v2304_v32 }
 0x2d0   : > { %2375 = vmatpush.msra.mxu1 %v2287_v23 }
 0x2d1   : > { %2395 = vmatpush.msra.mxu2 %v2303_v21 }
 0x304   : > { %v3610_v15 = vpop.f32.mrf.mxu1 }
 0x305   : > { %v3618_v39 = vpop.f32.mrf.mxu0 }
 0x30a   : > { %v3656_v49 = vpop.f32.mrf.mxu2 }
 0x30b   : > { %v1846_v52 = vpop.f32.mrf.mxu3 }
 0x30c   : > { %v3673_v56 = vpop.f32.mrf.mxu1 }
 0x30d   : > { %v3675_v58 = vpop.f32.mrf.mxu0 }
 0x30e   : > { %v1763_v31 = vadd.f32 %v3675_v58, %v3656_v49  ;;  %v2241_v58 = vperm.slane %v2237_v28, 2 }
 0x312   : > { %v1742_v0 = vpop.f32.mrf.mxu2 }
 0x313   : > { %v1954_v3 = vpop.f32.mrf.mxu3  ;;  %v1743_v11 = vadd.f32 %v1742_v0, %v3610_v15  ;;  %v2242_v0 = vperm.slane %v2237_v28, 3 }
 0x314   : > { %v1782_v6 = vpop.f32.mrf.mxu1 }
 0x315   : > { %v1866_v8 = vpop.f32.mrf.mxu0  ;;  %v1909_v20 = vadd.f32 %v1846_v52, %v1743_v11  ;;  %v1783_v17 = vadd.f32 %v1782_v6, %v3618_v39 }
 0x316   : > { %v1910_v33 = vadd.f32 %v1866_v8, %v1763_v31 }
 0x317   : > { %v2017_v26 = vadd.f32 %v1954_v3, %v1909_v20 }
 0x31a   : > { %v1802_v41 = vpop.f32.mrf.mxu2 }
 0x31b   : > { %v2062_v12 = vpop.f32.mrf.mxu3  ;;  %v1803_v49 = vadd.f32 %v1802_v41, %v3673_v56  ;;  %v2319_v56 = vld [vmem:[%s3774_s10] sm:$0x1] }
 0x31c   : > { %v1886_v22 = vpop.f32.mrf.mxu1  ;;  %v2125_v42 = vadd.f32 %v2062_v12, %v2017_v26 }
 0x31d   : > { %v1974_v1 = vpop.f32.mrf.mxu0  ;;  %v1911_v50 = vadd.f32 %v1886_v22, %v1783_v17 }
 0x31e   : > { %v2018_v24 = vadd.f32 %v1974_v1, %v1910_v33 }
 0x322   : > { %v1906_v19 = vpop.f32.mrf.mxu2 }
 0x323   : > { %v2170_v35 = vpop.f32.mrf.mxu3  ;;  %v1912_v59 = vadd.f32 %v1906_v19, %v1803_v49 }
 0x324   : > { %v2233_v15 = vadd.f32 %v2170_v35, %v2125_v42  ;;  %v1994_v13 = vpop.f32.mrf.mxu1 }
 0x325   : > { %v2082_v37 = vpop.f32.mrf.mxu0  ;;  %v2019_v52 = vadd.f32 %v1994_v13, %v1911_v50 }
 0x326   : > { %v2247_v43 = vadd.f32 %v2239_v34, %v2233_v15  ;;  %v2126_v47 = vadd.f32 %v2082_v37, %v2018_v24 }
 0x328   : > { %v2251_v44 = vmax.f32 %v2247_v43, 0.0 }
 0x32a   : > { %2336 = vmatmul.f32.vlgmr.msra.gmra.mxu3 %v2251_v44  ;;  %v2014_v45 = vpop.f32.mrf.mxu2 }
 0x32b   : > { %v2020_v61 = vadd.f32 %v2014_v45, %v1912_v59 }
 0x32c   : > { %v2102_v48 = vpop.f32.mrf.mxu1 }
 0x32d   : > { %v2190_v18 = vpop.f32.mrf.mxu0  ;;  %v2127_v55 = vadd.f32 %v2102_v48, %v2019_v52 }
 0x32e   : > { %v2234_v36 = vadd.f32 %v2190_v18, %v2126_v47 }
 0x330   : > { %v2248_v51 = vadd.f32 %v2240_v38, %v2234_v36 }
 0x332   : > { %v2252_v53 = vmax.f32 %v2248_v51, 0.0  ;;  %v2122_v54 = vpop.f32.mrf.mxu2 }
 0x333   : > { %v2128_v63 = vadd.f32 %v2122_v54, %v2020_v61 }
 0x334   : > { %2356 = vmatmul.f32.vlgmr.msrb.gmra.mxu0 %v2252_v53  ;;  %v2210_v30 = vpop.f32.mrf.mxu1 }
 0x335   : > { %v2235_v60 = vadd.f32 %v2210_v30, %v2127_v55 }
 0x337   : > { %v2249_v62 = vadd.f32 %v2241_v58, %v2235_v60 }
 0x339   : > { %v2253_v39 = vmax.f32 %v2249_v62, 0.0 }
 0x33a   : > { %v2230_v29 = vpop.f32.mrf.mxu2 }
 0x33b   : > { %v2236_v2 = vadd.f32 %v2230_v29, %v2128_v63  ;;  %2376 = vmatmul.f32.vlgmr.msra.gmra.mxu1 %v2253_v39 }
 0x33d   : > { %v2250_v46 = vadd.f32 %v2242_v0, %v2236_v2 }
 0x33f   : > { %v2254_v3 = vmax.f32 %v2250_v46, 0.0 }
 0x341   : > { %2396 = vmatmul.f32.vlgmr.msra.gmra.mxu2 %v2254_v3 }
 0x3ad   : > { %v2337_v5 = vpop.f32.mrf.mxu3 }
 0x3ae   : > { %v2338_v57 = vadd.f32 %v2337_v5, %v2319_v56 }
 0x3b1   : > { %v2357_v7 = vpop.f32.mrf.mxu0 }
 0x3b2   : > { %v2358_v8 = vadd.f32 %v2357_v7, %v2338_v57 }
 0x3b8   : > { %v2377_v6 = vpop.f32.mrf.mxu1 }
 0x3b9   : > { %v2378_v4 = vadd.f32 %v2377_v6, %v2358_v8 }
 0x3c4   : > { %v2397_v9 = vpop.f32.mrf.mxu2 }
 0x3c5   : > { %v2398_v11 = vadd.f32 %v2397_v9, %v2378_v4 }
 0x3c7   : > { %2401 = vst.msk [vmem:[%s382_s15] sm:$0x1] %vm2400_vm10, %v2398_v11 }
 0x3c8 PF: > { %s21_s17 = sadd.s32 1, %s2724_s17  }
 0x3c9   : > { %p18_p4 = scmp.ge.s32.totalorder %s21_s17, 4  }
 0x3cb   :  { %20 = sbr.rel (!%p18_p4) target bundleno = 1 (0x1), region = 117 }

</bundles_post_ra>
